<compile_context>
chip_gen: v7x
topology: tpu7x:2x2x1
jax: 0.10.0
libtpu: 0.0.40
codegen_flags: <defaults>
</compile_context>

<pallas_src>
import jax
import jax.numpy as jnp
from jax.experimental import pallas as pl
from jax.experimental.pallas import tpu as pltpu

# ----------------------------- configuration ------------------------------
B = 2                    # batch (kept at the module's batch; see TODO below)
IMG_H = IMG_W = 7        # minigrid-style 7x7x3 observation
A = 7                    # act_space.n
K = 8                    # k
GDIM = 64                # g_dim
CDIL = 30                # c (manager dilation)
ENC = 64 + 8             # enc_dim (72)
AK = A * K               # worker hidden (56)

H1 = IMG_H - 1           # conv1 output side (6)
P = H1 // 2              # maxpool output side (3)

NPOOL = B * P * P        # valid pooled rows (18), row = b*9 + pi*3 + pj
NPOOL_PAD = 24           # padded pooled rows per pool-window slab (8-aligned)
N1 = 4 * NPOOL_PAD       # conv1 im2col rows (96), 4 slabs of 24
N2 = 14                  # conv2 im2col rows (rows 2,5,6,7,8,11 are junk, never read)


def _elu(x):
    return jnp.where(x > 0, x, jnp.exp(jnp.minimum(x, 0.0)) - 1.0)


# ------------------------------- the kernel -------------------------------
# wslab lane offsets (all 128-aligned):
#     0: w1 [16,16]   128: w2 [64,32]   256: w3 [128,64]   384: fcw [64,64]
#   512: [mspw(pad 128) | wwcat] [128,288]        896: mwcat [128,256]
#  1152: phi tiled [64,56]   1280: sel [56,7]     1408: conv3 gather G3 [8,14]
# bslab lane offsets:
#     0: b1   128: b2   256: b3   384: fcb   512: [mspb | wb] (288)
#   896: mb (256)   1152: mvw^T (64)   1280: wvw^T (56)   1408: mvb, 1409: wvb
def fun_kernel(patches_ref, act_ref, w_ref, b_ref, out_ref):
    f32 = jnp.float32
    relu = lambda v: jnp.maximum(v, 0.0)

    # ---- conv1: single im2col matmul over all (pool-pos, batch, pool-window) rows
    c1 = relu(jnp.dot(patches_ref[...], w_ref[0:16, 0:16],
                      preferred_element_type=f32) + b_ref[:, 0:16])      # [96,16]

    # ---- maxpool 2x2/2: max of four 24-row (sublane-aligned) slabs, kept in vregs
    pool = jnp.maximum(jnp.maximum(c1[0:24], c1[24:48]),
                       jnp.maximum(c1[48:72], c1[72:96]))                # [24,16]

    # ---- conv2: im2col built as an in-register lane concat, one matmul
    p2 = jnp.concatenate([pool[0:14], pool[1:15], pool[3:17], pool[4:18]],
                         axis=1)                                         # [14,64]
    c2 = relu(jnp.dot(p2, w_ref[0:64, 128:160],
                      preferred_element_type=f32) + b_ref[:, 128:160])   # [14,32]

    # ---- conv3: constant gather matmul (rows ordered (tap, batch)) + lane concat
    x3 = jnp.dot(w_ref[0:8, 1408:1422], c2, preferred_element_type=f32)  # [8,32]
    p3 = jnp.concatenate([x3[0:2], x3[2:4], x3[4:6], x3[6:8]], axis=1)   # [B,128]
    feat = relu(jnp.dot(p3, w_ref[0:128, 256:320],
                        preferred_element_type=f32) + b_ref[:, 256:320]) # [B,64]

    # ---- fc + ELU; fused worker/manager input [z | dir_emb | wh_prev] ----------
    z = _elu(jnp.dot(feat, w_ref[0:64, 384:448],
                     preferred_element_type=f32) + b_ref[:, 384:448])    # [B,64]
    win = jnp.concatenate([z, act_ref[:, 192:256]], axis=1)              # [B,128]

    # ---- ONE fused matmul: manager projection (cols 0:64) + worker gates (64:288)
    sg = (jnp.dot(win, w_ref[0:128, 512:800], preferred_element_type=f32)
          + b_ref[:, 512:800])                                           # [B,288]
    s = _elu(sg[:, 0:64])
    wgates = sg[:, 64:288]

    # ---- manager dilated-LSTM cell on the prefetched slot ----------------------
    minp = jnp.concatenate([s, act_ref[:, 0:64]], axis=1)                # [B,128]
    gates = (jnp.dot(minp, w_ref[0:128, 896:1152], preferred_element_type=f32)
             + b_ref[:, 896:1152])                                       # [B,256]
    ig = jax.nn.sigmoid(gates[:, 0:64])
    fg = jax.nn.sigmoid(gates[:, 64:128])
    gg = jnp.tanh(gates[:, 128:192])
    og = jax.nn.sigmoid(gates[:, 192:256])
    c_new = fg * act_ref[:, 64:128] + ig * gg
    h_new = og * jnp.tanh(c_new)

    # F.normalize(g_h, dim=1)  (p=2, eps=1e-12)
    nrm = jnp.sqrt(jnp.sum(h_new * h_new, axis=1, keepdims=True))
    g_vec = h_new / jnp.maximum(nrm, 1e-12)
    # manager value head: VPU multiply + lane reduction (no N=1 MXU matmul)
    m_val = (jnp.sum(h_new * b_ref[:, 1152:1216], axis=1, keepdims=True)
             + b_ref[:, 1408:1409])                                      # [B,1]

    # ---- worker LSTM (single step; gates already produced by the fused matmul) -
    wig = jax.nn.sigmoid(wgates[:, 0:56])
    wfg = jax.nn.sigmoid(wgates[:, 56:112])
    wgg = jnp.tanh(wgates[:, 112:168])
    wog = jax.nn.sigmoid(wgates[:, 168:224])
    wc_new = wfg * act_ref[:, 256:312] + wig * wgg
    wh_new = wog * jnp.tanh(wc_new)
    w_val = (jnp.sum(wh_new * b_ref[:, 1280:1336], axis=1, keepdims=True)
             + b_ref[:, 1409:1410])                                      # [B,1]

    # ---- logits = U @ phi(goals.sum(1) + g), vectorized (tiled phi + 0/1 select)
    wtile = jnp.dot(act_ref[:, 128:192] + g_vec, w_ref[0:64, 1152:1208],
                    preferred_element_type=f32)                          # [B,56]
    logits = jnp.dot(wh_new * wtile, w_ref[0:56, 1280:1287],
                     preferred_element_type=f32)                         # [B,7]

    # ---- single lane-dense [B,384] store (64-lane fields) -----------------------
    z8 = jnp.zeros((B, 8), f32)
    tail = jnp.concatenate([logits, m_val, w_val, jnp.zeros((B, 55), f32)], axis=1)
    out_ref[...] = jnp.concatenate(
        [g_vec, h_new, c_new, wh_new, z8, wc_new, z8, tail], axis=1)


# ------------------------------- parameters --------------------------------
def init_params(key):
    def w(k, shape, fan_in):
        return jax.random.normal(k, shape, jnp.float32) / jnp.sqrt(float(fan_in))

    ks = jax.random.split(key, 16)
    z = lambda *s: jnp.zeros(s, jnp.float32)
    return {
        'c1w': w(ks[0], (4, 3, 16), 3 * 4),   'c1b': z(1, 16),
        'c2w': w(ks[1], (4, 16, 32), 16 * 4), 'c2b': z(1, 32),
        'c3w': w(ks[2], (4, 32, 64), 32 * 4), 'c3b': z(1, 64),
        'fcw': w(ks[3], (64, 64), 64),        'fcb': z(1, 64),
        'emb': w(ks[4], (4, 8), 1),
        'mspw': w(ks[5], (ENC, GDIM), ENC),   'mspb': z(1, GDIM),
        'mwih': w(ks[6], (GDIM, 4 * GDIM), GDIM),
        'mwhh': w(ks[7], (GDIM, 4 * GDIM), GDIM),
        'mb':  z(1, 4 * GDIM),
        'mvw': w(ks[8], (GDIM, 1), GDIM),     'mvb': z(1, 1),
        'phiw': w(ks[9], (GDIM, K), GDIM),
        'wwih': w(ks[10], (ENC, 4 * AK), ENC),
        'wwhh': w(ks[11], (AK, 4 * AK), AK),
        'wb':  z(1, 4 * AK),
        'wvw': w(ks[12], (AK, 1), AK),        'wvb': z(1, 1),
    }


def pack_params(params):
    """One-time weight/bias packing into two lane-dense slabs (hoisted out of
    the forward so no concat/tile/reshape HLOs re-execute per call)."""
    f32 = jnp.float32

    wslab = jnp.zeros((128, 1536), f32)

    def put(slab, c0, w):
        return slab.at[0:w.shape[0], c0:c0 + w.shape[1]].set(w)

    wslab = put(wslab, 0,    params['c1w'].reshape(12, 16))       # rows 12:16 stay 0
    wslab = put(wslab, 128,  params['c2w'].reshape(64, 32))
    wslab = put(wslab, 256,  params['c3w'].reshape(128, 64))
    wslab = put(wslab, 384,  params['fcw'])
    wslab = put(wslab, 512,  params['mspw'])                      # K padded 72->128 with 0
    wwcat = jnp.concatenate([params['wwih'], params['wwhh']], axis=0)   # [128,224]
    wslab = put(wslab, 576,  wwcat)
    mwcat = jnp.concatenate([params['mwih'], params['mwhh']], axis=0)   # [128,256]
    wslab = put(wslab, 896,  mwcat)
    wslab = put(wslab, 1152, jnp.tile(params['phiw'], (1, A)))          # [64,56]
    sel = (jnp.arange(AK)[:, None] // K == jnp.arange(A)[None, :]).astype(f32)  # [56,7]
    wslab = put(wslab, 1280, sel)
    # conv3 gather matrix: row t*B + b selects c2 row b*9 + {0,1,3,4}[t]
    offs = jnp.array([0, 1, 3, 4], jnp.int32)
    rows = jnp.arange(4 * B)
    tgt = (rows % B) * (P * P) + offs[rows // B]
    g3 = (jnp.arange(N2)[None, :] == tgt[:, None]).astype(f32)          # [8,14]
    wslab = put(wslab, 1408, g3)

    bslab = jnp.zeros((1, 1536), f32)
    bslab = bslab.at[:, 0:16].set(params['c1b'])
    bslab = bslab.at[:, 128:160].set(params['c2b'])
    bslab = bslab.at[:, 256:320].set(params['c3b'])
    bslab = bslab.at[:, 384:448].set(params['fcb'])
    bslab = bslab.at[:, 512:576].set(params['mspb'])
    bslab = bslab.at[:, 576:800].set(params['wb'])
    bslab = bslab.at[:, 896:1152].set(params['mb'])
    bslab = bslab.at[:, 1152:1216].set(params['mvw'].T)
    bslab = bslab.at[:, 1280:1336].set(params['wvw'].T)
    bslab = bslab.at[:, 1408:1409].set(params['mvb'])
    bslab = bslab.at[:, 1409:1410].set(params['wvb'])

    return {'wslab': wslab, 'bslab': bslab, 'emb': params['emb']}


# ------------------------------- the wrapper --------------------------------
@jax.jit
def fun_forward(packed, image, direction, mgr_h, mgr_c, wrk_h, wrk_c, goals, t):
    f32 = jnp.float32

    # conv1 im2col (pure data layout): rows ordered (pool-window-position,
    # batch, pool-window), each slab padded 18 -> 24 rows so the in-kernel
    # maxpool is a max of four sublane-aligned slabs.
    img = image.astype(f32)                                               # [B,7,7,3]
    tap_slices = [img[:, dy:dy + H1, dx:dx + H1, :]
                  for dy in range(2) for dx in range(2)]
    pat = jnp.concatenate(tap_slices, axis=-1)                            # [B,6,6,12]
    pat = pat.reshape(B, P, 2, P, 2, 12).transpose(2, 4, 0, 1, 3, 5)      # [u,v,B,pi,pj,12]
    pat = pat.reshape(4, NPOOL, 12)
    pat = jnp.pad(pat, ((0, 0), (0, NPOOL_PAD - NPOOL), (0, 4)))          # [4,24,16]
    patches1 = pat.reshape(N1, 16)                                        # [96,16]

    # wrapper-side data prep (cheap XLA fusions): dir embedding, goal sum,
    # dilated-LSTM slot gather.
    d = jnp.take(packed['emb'], direction.astype(jnp.int32), axis=0)      # [B,8]
    gsum = goals.astype(f32).sum(axis=1)                                  # [B,64]
    wh = wrk_h.reshape(B, AK)
    wc = wrk_c.reshape(B, AK)
    slot = jnp.asarray(t, jnp.int32) % CDIL
    mh_slot = mgr_h[slot]                                                 # [B,64]
    mc_slot = mgr_c[slot]

    # packed activation slab: [mh | mc | gsum | d | wh | wc | pad]
    act = jnp.concatenate(
        [mh_slot, mc_slot, gsum, d, wh, wc, jnp.zeros((B, 8), f32)], axis=1)  # [B,320]

    vmem = pl.BlockSpec(memory_space=pltpu.MemorySpace.VMEM)
    out = pl.pallas_call(
        fun_kernel,
        out_shape=jax.ShapeDtypeStruct((B, 384), jnp.float32),
        in_specs=[vmem, vmem, vmem, vmem],
        out_specs=vmem,
        cost_estimate=pl.CostEstimate(flops=500_000, transcendentals=2_000,
                                      bytes_accessed=820_000),
    )(patches1, act, packed['wslab'], packed['bslab'])

    g = out[:, 0:64]
    h_new = out[:, 64:128]
    c_new = out[:, 128:192]
    wh_new = out[:, 192:248]
    wc_new = out[:, 256:312]
    logits = out[:, 320:327]
    m_val = out[:, 327]
    w_val = out[:, 328]

    # dilated-LSTM slot scatter (glue): only the active slot changed.
    mh_n = mgr_h.at[slot].set(h_new)
    mc_n = mgr_c.at[slot].set(c_new)

    # TODO(synk): torch.distributions.Categorical has no Pallas equivalent;
    #             the kernel returns the logits that parameterize it.
    # TODO(synk): with B=2 a second v7x TensorCore brings nothing; add a
    #             "parallel" grid axis only once batches of envs are stacked.
    return (logits, m_val, w_val, g, (mh_n, mc_n), (wh_new[None], wc_new[None]))


# ---------------------------------- main -----------------------------------
if __name__ == "__main__":
    key = jax.random.PRNGKey(0)
    kp, ki, kd, kg = jax.random.split(key, 4)

    params = init_params(kp)
    packed = pack_params(params)          # one-time parameter packing

    image = jax.random.randint(ki, (B, IMG_H, IMG_W, 3), 0, 11).astype(jnp.float32)
    direction = jax.random.randint(kd, (B,), 0, 4)
    mgr_h = jnp.zeros((CDIL, B, GDIM), jnp.float32)
    mgr_c = jnp.zeros((CDIL, B, GDIM), jnp.float32)
    wrk_h = jnp.zeros((1, B, AK), jnp.float32)
    wrk_c = jnp.zeros((1, B, AK), jnp.float32)
    goals = jax.random.normal(kg, (B, CDIL, GDIM), jnp.float32) * 0.1
    t = jnp.int32(3)

    out = fun_forward(packed, image, direction, mgr_h, mgr_c, wrk_h, wrk_c,
                      goals, t)
    jax.block_until_ready(out)
    print("KERNEL_OK")
</pallas_src>

<mosaic_0001>
module attributes {stable_mosaic.version = 11 : i64} {
  func.func @fun_kernel(%arg0: memref<96x16xf32, #tpu.memory_space<vmem>>, %arg1: memref<2x320xf32, #tpu.memory_space<vmem>>, %arg2: memref<128x1536xf32, #tpu.memory_space<vmem>>, %arg3: memref<1x1536xf32, #tpu.memory_space<vmem>>, %arg4: memref<2x384xf32, #tpu.memory_space<vmem>>) attributes {dimension_semantics = [], scalar_prefetch = 0 : i64, scratch_operands = 0 : i64, tpu.core_type = #tpu.core_type<tc>} {
    %c0 = arith.constant 0 : index
    %c0_0 = arith.constant 0 : index
    %0 = vector.load %arg0[%c0, %c0_0] : memref<96x16xf32, #tpu.memory_space<vmem>>, vector<96x16xf32>
    %c0_1 = arith.constant 0 : index
    %c0_2 = arith.constant 0 : index
    %1 = vector.load %arg2[%c0_1, %c0_2] : memref<128x1536xf32, #tpu.memory_space<vmem>>, vector<16x16xf32>
    %cst = arith.constant dense<0.000000e+00> : vector<96x16xf32>
    %2 = tpu.matmul %0, %1, %cst {dimension_numbers = #tpu.dot_dimension_numbers<[1], [0], [0], [1], [0, 0, 1, 1], [], []>} : vector<96x16xf32>, vector<16x16xf32>, vector<96x16xf32> -> vector<96x16xf32>
    %c0_3 = arith.constant 0 : index
    %c0_4 = arith.constant 0 : index
    %3 = vector.load %arg3[%c0_3, %c0_4] : memref<1x1536xf32, #tpu.memory_space<vmem>>, vector<1x16xf32>
    %4 = vector.broadcast %3 : vector<1x16xf32> to vector<96x16xf32>
    %5 = arith.addf %2, %4 : vector<96x16xf32>
    %cst_5 = arith.constant 0.000000e+00 : f32
    %6 = vector.broadcast %cst_5 : f32 to vector<96x16xf32>
    %7 = arith.maximumf %5, %6 : vector<96x16xf32>
    %8 = vector.extract_strided_slice %7 {offsets = [0, 0], sizes = [24, 16], strides = [1, 1]} : vector<96x16xf32> to vector<24x16xf32>
    %9 = vector.extract_strided_slice %7 {offsets = [24, 0], sizes = [24, 16], strides = [1, 1]} : vector<96x16xf32> to vector<24x16xf32>
    %10 = arith.maximumf %8, %9 : vector<24x16xf32>
    %11 = vector.extract_strided_slice %7 {offsets = [48, 0], sizes = [24, 16], strides = [1, 1]} : vector<96x16xf32> to vector<24x16xf32>
    %12 = vector.extract_strided_slice %7 {offsets = [72, 0], sizes = [24, 16], strides = [1, 1]} : vector<96x16xf32> to vector<24x16xf32>
    %13 = arith.maximumf %11, %12 : vector<24x16xf32>
    %14 = arith.maximumf %10, %13 : vector<24x16xf32>
    %15 = vector.extract_strided_slice %14 {offsets = [0, 0], sizes = [14, 16], strides = [1, 1]} : vector<24x16xf32> to vector<14x16xf32>
    %16 = vector.extract_strided_slice %14 {offsets = [1, 0], sizes = [14, 16], strides = [1, 1]} : vector<24x16xf32> to vector<14x16xf32>
    %17 = vector.extract_strided_slice %14 {offsets = [3, 0], sizes = [14, 16], strides = [1, 1]} : vector<24x16xf32> to vector<14x16xf32>
    %18 = vector.extract_strided_slice %14 {offsets = [4, 0], sizes = [14, 16], strides = [1, 1]} : vector<24x16xf32> to vector<14x16xf32>
    %19 = tpu.concatenate %15, %16, %17, %18 in 1 : vector<14x16xf32>, vector<14x16xf32>, vector<14x16xf32>, vector<14x16xf32> -> vector<14x64xf32>
    %c0_6 = arith.constant 0 : index
    %c128 = arith.constant 128 : index
    %20 = vector.load %arg2[%c0_6, %c128] : memref<128x1536xf32, #tpu.memory_space<vmem>>, vector<64x32xf32>
    %cst_7 = arith.constant dense<0.000000e+00> : vector<14x32xf32>
    %21 = tpu.matmul %19, %20, %cst_7 {dimension_numbers = #tpu.dot_dimension_numbers<[1], [0], [0], [1], [0, 0, 1, 1], [], []>} : vector<14x64xf32>, vector<64x32xf32>, vector<14x32xf32> -> vector<14x32xf32>
    %c0_8 = arith.constant 0 : index
    %c128_9 = arith.constant 128 : index
    %22 = vector.load %arg3[%c0_8, %c128_9] : memref<1x1536xf32, #tpu.memory_space<vmem>>, vector<1x32xf32>
    %23 = vector.broadcast %22 : vector<1x32xf32> to vector<14x32xf32>
    %24 = arith.addf %21, %23 : vector<14x32xf32>
    %cst_10 = arith.constant 0.000000e+00 : f32
    %25 = vector.broadcast %cst_10 : f32 to vector<14x32xf32>
    %26 = arith.maximumf %24, %25 : vector<14x32xf32>
    %c0_11 = arith.constant 0 : index
    %c1408 = arith.constant 1408 : index
    %27 = vector.load %arg2[%c0_11, %c1408] : memref<128x1536xf32, #tpu.memory_space<vmem>>, vector<8x14xf32>
    %cst_12 = arith.constant dense<0.000000e+00> : vector<8x32xf32>
    %28 = tpu.matmul %27, %26, %cst_12 {dimension_numbers = #tpu.dot_dimension_numbers<[1], [0], [0], [1], [0, 0, 1, 1], [], []>} : vector<8x14xf32>, vector<14x32xf32>, vector<8x32xf32> -> vector<8x32xf32>
    %29 = vector.extract_strided_slice %28 {offsets = [0, 0], sizes = [2, 32], strides = [1, 1]} : vector<8x32xf32> to vector<2x32xf32>
    %30 = vector.extract_strided_slice %28 {offsets = [2, 0], sizes = [2, 32], strides = [1, 1]} : vector<8x32xf32> to vector<2x32xf32>
    %31 = vector.extract_strided_slice %28 {offsets = [4, 0], sizes = [2, 32], strides = [1, 1]} : vector<8x32xf32> to vector<2x32xf32>
    %32 = vector.extract_strided_slice %28 {offsets = [6, 0], sizes = [2, 32], strides = [1, 1]} : vector<8x32xf32> to vector<2x32xf32>
    %33 = tpu.concatenate %29, %30, %31, %32 in 1 : vector<2x32xf32>, vector<2x32xf32>, vector<2x32xf32>, vector<2x32xf32> -> vector<2x128xf32>
    %c0_13 = arith.constant 0 : index
    %c256 = arith.constant 256 : index
    %34 = vector.load %arg2[%c0_13, %c256] : memref<128x1536xf32, #tpu.memory_space<vmem>>, vector<128x64xf32>
    %cst_14 = arith.constant dense<0.000000e+00> : vector<2x64xf32>
    %35 = tpu.matmul %33, %34, %cst_14 {dimension_numbers = #tpu.dot_dimension_numbers<[1], [0], [0], [1], [0, 0, 1, 1], [], []>} : vector<2x128xf32>, vector<128x64xf32>, vector<2x64xf32> -> vector<2x64xf32>
    %c0_15 = arith.constant 0 : index
    %c256_16 = arith.constant 256 : index
    %36 = vector.load %arg3[%c0_15, %c256_16] : memref<1x1536xf32, #tpu.memory_space<vmem>>, vector<1x64xf32>
    %37 = vector.broadcast %36 : vector<1x64xf32> to vector<2x64xf32>
    %38 = arith.addf %35, %37 : vector<2x64xf32>
    %cst_17 = arith.constant 0.000000e+00 : f32
    %39 = vector.broadcast %cst_17 : f32 to vector<2x64xf32>
    %40 = arith.maximumf %38, %39 : vector<2x64xf32>
    %c0_18 = arith.constant 0 : index
    %c384 = arith.constant 384 : index
    %41 = vector.load %arg2[%c0_18, %c384] : memref<128x1536xf32, #tpu.memory_space<vmem>>, vector<64x64xf32>
    %cst_19 = arith.constant dense<0.000000e+00> : vector<2x64xf32>
    %42 = tpu.matmul %40, %41, %cst_19 {dimension_numbers = #tpu.dot_dimension_numbers<[1], [0], [0], [1], [0, 0, 1, 1], [], []>} : vector<2x64xf32>, vector<64x64xf32>, vector<2x64xf32> -> vector<2x64xf32>
    %c0_20 = arith.constant 0 : index
    %c384_21 = arith.constant 384 : index
    %43 = vector.load %arg3[%c0_20, %c384_21] : memref<1x1536xf32, #tpu.memory_space<vmem>>, vector<1x64xf32>
    %44 = vector.broadcast %43 : vector<1x64xf32> to vector<2x64xf32>
    %45 = arith.addf %42, %44 : vector<2x64xf32>
    %cst_22 = arith.constant 0.000000e+00 : f32
    %46 = vector.broadcast %cst_22 : f32 to vector<2x64xf32>
    %47 = arith.cmpf ogt, %45, %46 : vector<2x64xf32>
    %cst_23 = arith.constant 0.000000e+00 : f32
    %48 = vector.broadcast %cst_23 : f32 to vector<2x64xf32>
    %49 = arith.minimumf %45, %48 : vector<2x64xf32>
    %50 = math.exp %49 : vector<2x64xf32>
    %cst_24 = arith.constant 1.000000e+00 : f32
    %51 = vector.broadcast %cst_24 : f32 to vector<2x64xf32>
    %52 = arith.subf %50, %51 : vector<2x64xf32>
    %53 = arith.select %47, %45, %52 : vector<2x64xi1>, vector<2x64xf32>
    %c0_25 = arith.constant 0 : index
    %c192 = arith.constant 192 : index
    %54 = vector.load %arg1[%c0_25, %c192] : memref<2x320xf32, #tpu.memory_space<vmem>>, vector<2x64xf32>
    %55 = tpu.concatenate %53, %54 in 1 : vector<2x64xf32>, vector<2x64xf32> -> vector<2x128xf32>
    %c0_26 = arith.constant 0 : index
    %c512 = arith.constant 512 : index
    %56 = vector.load %arg2[%c0_26, %c512] : memref<128x1536xf32, #tpu.memory_space<vmem>>, vector<128x288xf32>
    %cst_27 = arith.constant dense<0.000000e+00> : vector<2x288xf32>
    %57 = tpu.matmul %55, %56, %cst_27 {dimension_numbers = #tpu.dot_dimension_numbers<[1], [0], [0], [1], [0, 0, 1, 1], [], []>} : vector<2x128xf32>, vector<128x288xf32>, vector<2x288xf32> -> vector<2x288xf32>
    %c0_28 = arith.constant 0 : index
    %c512_29 = arith.constant 512 : index
    %58 = vector.load %arg3[%c0_28, %c512_29] : memref<1x1536xf32, #tpu.memory_space<vmem>>, vector<1x288xf32>
    %59 = vector.broadcast %58 : vector<1x288xf32> to vector<2x288xf32>
    %60 = arith.addf %57, %59 : vector<2x288xf32>
    %61 = vector.extract_strided_slice %60 {offsets = [0, 0], sizes = [2, 64], strides = [1, 1]} : vector<2x288xf32> to vector<2x64xf32>
    %cst_30 = arith.constant 0.000000e+00 : f32
    %62 = vector.broadcast %cst_30 : f32 to vector<2x64xf32>
    %63 = arith.cmpf ogt, %61, %62 : vector<2x64xf32>
    %cst_31 = arith.constant 0.000000e+00 : f32
    %64 = vector.broadcast %cst_31 : f32 to vector<2x64xf32>
    %65 = arith.minimumf %61, %64 : vector<2x64xf32>
    %66 = math.exp %65 : vector<2x64xf32>
    %cst_32 = arith.constant 1.000000e+00 : f32
    %67 = vector.broadcast %cst_32 : f32 to vector<2x64xf32>
    %68 = arith.subf %66, %67 : vector<2x64xf32>
    %69 = arith.select %63, %61, %68 : vector<2x64xi1>, vector<2x64xf32>
    %70 = vector.extract_strided_slice %60 {offsets = [0, 64], sizes = [2, 224], strides = [1, 1]} : vector<2x288xf32> to vector<2x224xf32>
    %c0_33 = arith.constant 0 : index
    %c0_34 = arith.constant 0 : index
    %71 = vector.load %arg1[%c0_33, %c0_34] : memref<2x320xf32, #tpu.memory_space<vmem>>, vector<2x64xf32>
    %72 = tpu.concatenate %69, %71 in 1 : vector<2x64xf32>, vector<2x64xf32> -> vector<2x128xf32>
    %c0_35 = arith.constant 0 : index
    %c896 = arith.constant 896 : index
    %73 = vector.load %arg2[%c0_35, %c896] : memref<128x1536xf32, #tpu.memory_space<vmem>>, vector<128x256xf32>
    %cst_36 = arith.constant dense<0.000000e+00> : vector<2x256xf32>
    %74 = tpu.matmul %72, %73, %cst_36 {dimension_numbers = #tpu.dot_dimension_numbers<[1], [0], [0], [1], [0, 0, 1, 1], [], []>} : vector<2x128xf32>, vector<128x256xf32>, vector<2x256xf32> -> vector<2x256xf32>
    %c0_37 = arith.constant 0 : index
    %c896_38 = arith.constant 896 : index
    %75 = vector.load %arg3[%c0_37, %c896_38] : memref<1x1536xf32, #tpu.memory_space<vmem>>, vector<1x256xf32>
    %76 = vector.broadcast %75 : vector<1x256xf32> to vector<2x256xf32>
    %77 = arith.addf %74, %76 : vector<2x256xf32>
    %78 = vector.extract_strided_slice %77 {offsets = [0, 0], sizes = [2, 64], strides = [1, 1]} : vector<2x256xf32> to vector<2x64xf32>
    %79 = arith.negf %78 : vector<2x64xf32>
    %80 = math.exp %79 : vector<2x64xf32>
    %cst_39 = arith.constant 1.000000e+00 : f32
    %81 = vector.broadcast %cst_39 : f32 to vector<2x64xf32>
    %82 = arith.addf %81, %80 : vector<2x64xf32>
    %83 = arith.divf %81, %82 : vector<2x64xf32>
    %84 = vector.extract_strided_slice %77 {offsets = [0, 64], sizes = [2, 64], strides = [1, 1]} : vector<2x256xf32> to vector<2x64xf32>
    %85 = arith.negf %84 : vector<2x64xf32>
    %86 = math.exp %85 : vector<2x64xf32>
    %cst_40 = arith.constant 1.000000e+00 : f32
    %87 = vector.broadcast %cst_40 : f32 to vector<2x64xf32>
    %88 = arith.addf %87, %86 : vector<2x64xf32>
    %89 = arith.divf %87, %88 : vector<2x64xf32>
    %90 = vector.extract_strided_slice %77 {offsets = [0, 128], sizes = [2, 64], strides = [1, 1]} : vector<2x256xf32> to vector<2x64xf32>
    %91 = math.tanh %90 : vector<2x64xf32>
    %92 = vector.extract_strided_slice %77 {offsets = [0, 192], sizes = [2, 64], strides = [1, 1]} : vector<2x256xf32> to vector<2x64xf32>
    %93 = arith.negf %92 : vector<2x64xf32>
    %94 = math.exp %93 : vector<2x64xf32>
    %cst_41 = arith.constant 1.000000e+00 : f32
    %95 = vector.broadcast %cst_41 : f32 to vector<2x64xf32>
    %96 = arith.addf %95, %94 : vector<2x64xf32>
    %97 = arith.divf %95, %96 : vector<2x64xf32>
    %c0_42 = arith.constant 0 : index
    %c64 = arith.constant 64 : index
    %98 = vector.load %arg1[%c0_42, %c64] : memref<2x320xf32, #tpu.memory_space<vmem>>, vector<2x64xf32>
    %99 = arith.mulf %89, %98 : vector<2x64xf32>
    %100 = arith.mulf %83, %91 : vector<2x64xf32>
    %101 = arith.addf %99, %100 : vector<2x64xf32>
    %102 = math.tanh %101 : vector<2x64xf32>
    %103 = arith.mulf %97, %102 : vector<2x64xf32>
    %104 = arith.mulf %103, %103 : vector<2x64xf32>
    %cst_43 = arith.constant dense<0.000000e+00> : vector<2xf32>
    %105 = vector.multi_reduction <add>, %104, %cst_43 [1] : vector<2x64xf32> to vector<2xf32>
    %106 = vector.shape_cast %105 : vector<2xf32> to vector<2x1xf32>
    %107 = math.sqrt %106 : vector<2x1xf32>
    %cst_44 = arith.constant 9.99999996E-13 : f32
    %108 = vector.broadcast %cst_44 : f32 to vector<2x1xf32>
    %109 = arith.maximumf %107, %108 : vector<2x1xf32>
    %110 = vector.broadcast %109 : vector<2x1xf32> to vector<2x64xf32>
    %111 = arith.divf %103, %110 : vector<2x64xf32>
    %c0_45 = arith.constant 0 : index
    %c1152 = arith.constant 1152 : index
    %112 = vector.load %arg3[%c0_45, %c1152] : memref<1x1536xf32, #tpu.memory_space<vmem>>, vector<1x64xf32>
    %113 = vector.broadcast %112 : vector<1x64xf32> to vector<2x64xf32>
    %114 = arith.mulf %103, %113 : vector<2x64xf32>
    %cst_46 = arith.constant dense<0.000000e+00> : vector<2xf32>
    %115 = vector.multi_reduction <add>, %114, %cst_46 [1] : vector<2x64xf32> to vector<2xf32>
    %116 = vector.shape_cast %115 : vector<2xf32> to vector<2x1xf32>
    %c0_47 = arith.constant 0 : index
    %c1408_48 = arith.constant 1408 : index
    %117 = vector.load %arg3[%c0_47, %c1408_48] : memref<1x1536xf32, #tpu.memory_space<vmem>>, vector<1x1xf32>
    %118 = vector.broadcast %117 : vector<1x1xf32> to vector<2x1xf32>
    %119 = arith.addf %116, %118 : vector<2x1xf32>
    %120 = vector.extract_strided_slice %70 {offsets = [0, 0], sizes = [2, 56], strides = [1, 1]} : vector<2x224xf32> to vector<2x56xf32>
    %121 = arith.negf %120 : vector<2x56xf32>
    %122 = math.exp %121 : vector<2x56xf32>
    %cst_49 = arith.constant 1.000000e+00 : f32
    %123 = vector.broadcast %cst_49 : f32 to vector<2x56xf32>
    %124 = arith.addf %123, %122 : vector<2x56xf32>
    %125 = arith.divf %123, %124 : vector<2x56xf32>
    %126 = vector.extract_strided_slice %70 {offsets = [0, 56], sizes = [2, 56], strides = [1, 1]} : vector<2x224xf32> to vector<2x56xf32>
    %127 = arith.negf %126 : vector<2x56xf32>
    %128 = math.exp %127 : vector<2x56xf32>
    %cst_50 = arith.constant 1.000000e+00 : f32
    %129 = vector.broadcast %cst_50 : f32 to vector<2x56xf32>
    %130 = arith.addf %129, %128 : vector<2x56xf32>
    %131 = arith.divf %129, %130 : vector<2x56xf32>
    %132 = vector.extract_strided_slice %70 {offsets = [0, 112], sizes = [2, 56], strides = [1, 1]} : vector<2x224xf32> to vector<2x56xf32>
    %133 = math.tanh %132 : vector<2x56xf32>
    %134 = vector.extract_strided_slice %70 {offsets = [0, 168], sizes = [2, 56], strides = [1, 1]} : vector<2x224xf32> to vector<2x56xf32>
    %135 = arith.negf %134 : vector<2x56xf32>
    %136 = math.exp %135 : vector<2x56xf32>
    %cst_51 = arith.constant 1.000000e+00 : f32
    %137 = vector.broadcast %cst_51 : f32 to vector<2x56xf32>
    %138 = arith.addf %137, %136 : vector<2x56xf32>
    %139 = arith.divf %137, %138 : vector<2x56xf32>
    %c0_52 = arith.constant 0 : index
    %c256_53 = arith.constant 256 : index
    %140 = vector.load %arg1[%c0_52, %c256_53] : memref<2x320xf32, #tpu.memory_space<vmem>>, vector<2x56xf32>
    %141 = arith.mulf %131, %140 : vector<2x56xf32>
    %142 = arith.mulf %125, %133 : vector<2x56xf32>
    %143 = arith.addf %141, %142 : vector<2x56xf32>
    %144 = math.tanh %143 : vector<2x56xf32>
    %145 = arith.mulf %139, %144 : vector<2x56xf32>
    %c0_54 = arith.constant 0 : index
    %c1280 = arith.constant 1280 : index
    %146 = vector.load %arg3[%c0_54, %c1280] : memref<1x1536xf32, #tpu.memory_space<vmem>>, vector<1x56xf32>
    %147 = vector.broadcast %146 : vector<1x56xf32> to vector<2x56xf32>
    %148 = arith.mulf %145, %147 : vector<2x56xf32>
    %cst_55 = arith.constant dense<0.000000e+00> : vector<2xf32>
    %149 = vector.multi_reduction <add>, %148, %cst_55 [1] : vector<2x56xf32> to vector<2xf32>
    %150 = vector.shape_cast %149 : vector<2xf32> to vector<2x1xf32>
    %c0_56 = arith.constant 0 : index
    %c1409 = arith.constant 1409 : index
    %151 = vector.load %arg3[%c0_56, %c1409] : memref<1x1536xf32, #tpu.memory_space<vmem>>, vector<1x1xf32>
    %152 = vector.broadcast %151 : vector<1x1xf32> to vector<2x1xf32>
    %153 = arith.addf %150, %152 : vector<2x1xf32>
    %c0_57 = arith.constant 0 : index
    %c128_58 = arith.constant 128 : index
    %154 = vector.load %arg1[%c0_57, %c128_58] : memref<2x320xf32, #tpu.memory_space<vmem>>, vector<2x64xf32>
    %155 = arith.addf %154, %111 : vector<2x64xf32>
    %c0_59 = arith.constant 0 : index
    %c1152_60 = arith.constant 1152 : index
    %156 = vector.load %arg2[%c0_59, %c1152_60] : memref<128x1536xf32, #tpu.memory_space<vmem>>, vector<64x56xf32>
    %cst_61 = arith.constant dense<0.000000e+00> : vector<2x56xf32>
    %157 = tpu.matmul %155, %156, %cst_61 {dimension_numbers = #tpu.dot_dimension_numbers<[1], [0], [0], [1], [0, 0, 1, 1], [], []>} : vector<2x64xf32>, vector<64x56xf32>, vector<2x56xf32> -> vector<2x56xf32>
    %158 = arith.mulf %145, %157 : vector<2x56xf32>
    %c0_62 = arith.constant 0 : index
    %c1280_63 = arith.constant 1280 : index
    %159 = vector.load %arg2[%c0_62, %c1280_63] : memref<128x1536xf32, #tpu.memory_space<vmem>>, vector<56x7xf32>
    %cst_64 = arith.constant dense<0.000000e+00> : vector<2x7xf32>
    %160 = tpu.matmul %158, %159, %cst_64 {dimension_numbers = #tpu.dot_dimension_numbers<[1], [0], [0], [1], [0, 0, 1, 1], [], []>} : vector<2x56xf32>, vector<56x7xf32>, vector<2x7xf32> -> vector<2x7xf32>
    %cst_65 = arith.constant 0.000000e+00 : f32
    %161 = vector.broadcast %cst_65 : f32 to vector<2x8xf32>
    %cst_66 = arith.constant 0.000000e+00 : f32
    %162 = vector.broadcast %cst_66 : f32 to vector<2x55xf32>
    %163 = tpu.concatenate %160, %119, %153, %162 in 1 : vector<2x7xf32>, vector<2x1xf32>, vector<2x1xf32>, vector<2x55xf32> -> vector<2x64xf32>
    %164 = tpu.concatenate %111, %103, %101, %145, %161, %143, %161, %163 in 1 : vector<2x64xf32>, vector<2x64xf32>, vector<2x64xf32>, vector<2x56xf32>, vector<2x8xf32>, vector<2x56xf32>, vector<2x8xf32>, vector<2x64xf32> -> vector<2x384xf32>
    %c0_67 = arith.constant 0 : index
    %c0_68 = arith.constant 0 : index
    %165 = vector.load %arg4[%c0_67, %c0_68] : memref<2x384xf32, #tpu.memory_space<vmem>>, vector<2x384xf32>
    tpu.vector_store %arg4[%c0_67, %c0_68], %164 {strides = array<i32>} : memref<2x384xf32, #tpu.memory_space<vmem>>, vector<2x384xf32>,
    return
  }
}

</mosaic_0001>

<bundles_post_ra>
// kernel: fun_forward.1
= control target key start
LH: loop header
LB: loop body
LE: loop exit
PB: predicated region body
PF: predicated region fallthrough
CT: control target
= control target key end

     0   :  { %vm38_vm0 = vcmask 130048   ;;  %vm234_vm1 = vcmask 1044480   ;;  %s1921_s8 = smov 16   ;;  %vm223_vm2 = vcmask 1046528   ;;  %s1922_s9 = smov 32   ;;  %vm246_vm3 = vcmask 1043456   ;;  %s2582_s2 = inlined_call_operand.vmem [shape: f32[128,1536], index: 2, kind: input, shape index: {}]   ;;  %s2583_s0 = inlined_call_operand.vmem [shape: f32[96,16], index: 0, kind: input, shape index: {}]   ;;  %s2584_s3 = inlined_call_operand.vmem [shape: f32[1,1536], index: 3, kind: input, shape index: {}]   ;;  %s2585_s1 = inlined_call_operand.vmem [shape: f32[2,320], index: 1, kind: input, shape index: {}]   ;;  %s2586_s4 = inlined_call_operand.vmem [shape: f32[2,384], index: 4, kind: output, shape index: {}]  }
   0x1   :  { %v29_v0 = vld [vmem:[%s2582_s2] sm:$0xff]  ;;  %v18_v4 = vld [vmem:[%s2583_s0 + $0x8] sm:$0xff]  ;;  %v19_v5 = vld [vmem:[%s2583_s0 + $0x10] sm:$0xff]  ;;  %s1923_s10 = smov 48   ;;  %vm260_vm4 = vcmask 261120   ;;  %vm263_vm5 = vcmask 392192  }
   0x2   :  { %v30_v1 = vld [vmem:[%s2582_s2 + $0x60] sm:$0xff]  ;;  %v20_v6 = vld [vmem:[%s2583_s0 + $0x18] sm:$0xff]  ;;  %v22_v8 = vld [vmem:[%s2583_s0 + $0x28] sm:$0xff]  ;;  %vm281_vm6 = vcmask 523264   ;;  %vm1925_vm7 = vmmov 0   ;;  %vm370_vm8 = vcmask 1045504  }
   0x3   :  { %v17_v2 = vld [vmem:[%s2583_s0] sm:$0xff]  ;;  %v1696_v3 = vpack.c.bf16 %v30_v1, %v29_v0  ;;  %v23_v9 = vld [vmem:[%s2583_s0 + $0x30] sm:$0xff]  ;;  %v24_v10 = vld [vmem:[%s2583_s0 + $0x38] sm:$0xff]  ;;  %vm1927_vm9 = vmmov 1   ;;  %vm366_vm11 = vcmask 113664   ;;  %s1928_s7 = smov 64  }
   0x4   :  { %1527 = vmatprep.mubr.msk.f32.mxu0 %vm38_vm0, %v17_v2  ;;  %v21_v7 = vld [vmem:[%s2583_s0 + $0x20] sm:$0xff]  ;;  %v26_v12 = vld [vmem:[%s2583_s0 + $0x48] sm:$0xff]  ;;  %v27_v13 = vld [vmem:[%s2583_s0 + $0x50] sm:$0xff]  ;;  %vm459_vm12 = vcmask 785408   ;;  %vm1019_vm15 = vcmask 517120   ;;  %s1931_s30 = smov 120  }
   0x5   :  { %1697 = vmatprep.subr.bf16.mxu0 %v1696_v3  ;;  %v25_v11 = vld [vmem:[%s2583_s0 + $0x40] sm:$0xff]  ;;  %v28_v14 = vld [vmem:[%s2583_s0 + $0x58] sm:$0xff]  ;;  %v266_v15 = vld [vmem:[%s2582_s2 + $0x8] sm:$0xff]  ;;  %s1934_s17 = smov 104   ;;  %s1935_s24 = smov 24  }
   0x6   :  { %1699 = vmatpush3.bf16.msra.mxu0 %v1696_v3  ;;  %v267_v16 = vld [vmem:[%s2582_s2 + $0x68] sm:$0xff]  ;;  %v1401_v22 = vld [vmem:[%s2584_s3] ss:$0 sm:$0xff]  ;;  %vm1718_vm10 = vmpackc.low %vm370_vm8, %vm1927_vm9  ;;  %s1936_s29 = smov 7   ;;  %s1938_s5 = smov 8   ;;  %vm1338_vm8 = vcmask 64512  }
   0x7   :  { %v268_v17 = vld [vmem:[%s2582_s2 + $0xc8] sm:$0xff]  ;;  %v1700_v18 = vpack.c.bf16 %v267_v16, %v266_v15  ;;  %vm1340_vm9 = vcmask 72704  }
   0x8   :  { %v269_v19 = vld [vmem:[%s2582_s2 + $0x128] sm:$0xff] }
   0x9   :  { %1528 = vmatmul.mubr.msk.f32.vlgmr.msra.gmra.mrb[0].mxu0 %vm38_vm0, %v18_v4  ;;  %v1704_v20 = vpack.c.bf16 %v269_v19, %v268_v17  ;;  %1701 = vmatprep.subr.bf16.mxu1 %v1700_v18  ;;  %v270_v52 = vld [vmem:[%s2582_s2 + $0x188] sm:$0xff] }
   0xa   :  { %1530 = vmatprep.mubr.msk.f32.mxu0 %vm38_vm0, %v19_v5  ;;  %1703 = vmatpush3.bf16.msra.mxu1 %v1700_v18  ;;  %v271_v53 = vld [vmem:[%s2582_s2 + $0x1e8] sm:$0xff] }
   0xb   :  { %1705 = vmatprep.subr.bf16.mxu1 %v1704_v20  ;;  %v1708_v56 = vpack.c.bf16 %v271_v53, %v270_v52  ;;  %v272_v0 = vld [vmem:[%s2582_s2 + $0x248] sm:$0xff]  ;;  %v466_v52 = vld [vmem:[%s2582_s2 + $0x1f0] sm:$0xff] }
   0xc   :  { %v273_v1 = vld [vmem:[%s2582_s2 + $0x2a8] sm:$0xff] }
   0xd   :  { %1531 = vmatmul.mubr.msk.f32.gmra.mrb[2].mxu0 %vm38_vm0, %v20_v6  ;;  %v1712_v4 = vpack.c.bf16 %v273_v1, %v272_v0  ;;  %v474_v0 = vld [vmem:[%s2582_s2 + $0x4f0] sm:$0xff] }
   0xe   :  { %1533 = vmatprep.mubr.msk.f32.mxu0 %vm38_vm0, %v21_v7  ;;  %1707 = vmatpush3.bf16.msra.mxu1 %v1704_v20 }
   0xf   :  { %1709 = vmatprep.subr.bf16.mxu1 %v1708_v56 }
  0x11   :  { %1534 = vmatmul.mubr.msk.f32.gmra.mrb[4].mxu0 %vm38_vm0, %v22_v8 }
  0x12   :  { %1536 = vmatprep.mubr.msk.f32.mxu0 %vm38_vm0, %v23_v9  ;;  %1711 = vmatpush3.bf16.msra.mxu1 %v1708_v56 }
  0x13   :  { %1713 = vmatprep.subr.bf16.mxu1 %v1712_v4 }
  0x15   :  { %1537 = vmatmul.mubr.msk.f32.gmra.mrb[6].mxu0 %vm38_vm0, %v24_v10 }
  0x16   :  { %1539 = vmatprep.mubr.msk.f32.mxu0 %vm38_vm0, %v25_v11  ;;  %1715 = vmatpush3.bf16.msra.mxu1 %v1712_v4 }
  0x19   :  { %1540 = vmatmul.mubr.msk.f32.gmra.mrb[8].mxu0 %vm38_vm0, %v26_v12 }
  0x1a   :  { %1542 = vmatprep.mubr.msk.f32.mxu0 %vm38_vm0, %v27_v13 }
  0x1d   :  { %1543 = vmatmul.mubr.msk.f32.gmra.mrb[10].mxu0 %vm38_vm0, %v28_v14 }
  0xdc   :  { %v1529_v21 = vpop.f32.mrb[0].mxu0 }
  0xdd   :  { %v141_v23 = vpop.f32.mrb[1].mxu0  ;;  %v147_v31 = vadd.f32 %v1529_v21, %v1401_v22 }
  0xde   :  { %v142_v24 = vadd.f32 %v1401_v22, %v141_v23 }
  0xdf   :  { %v201_v39 = vmax.f32 %v147_v31, 0.0 }
  0xe0   :  { %v1532_v25 = vpop.f32.mrb[2].mxu0  ;;  %v200_v28 = vmax.f32 %v142_v24, 0.0 }
  0xe1   :  { %v157_v26 = vadd.f32 %v1532_v25, %v1401_v22  ;;  %v151_v27 = vpop.f32.mrb[3].mxu0 }
  0xe2   :  { %v152_v30 = vadd.f32 %v1401_v22, %v151_v27 }
  0xe3   :  { %v203_v29 = vmax.f32 %v157_v26, 0.0 }
  0xe4   :  { %v1535_v32 = vpop.f32.mrb[4].mxu0  ;;  %v202_v37 = vmax.f32 %v152_v30, 0.0 }
  0xe5   :  { %v212_v33 = vmax.f32 %v200_v28, %v203_v29  ;;  %v167_v34 = vadd.f32 %v1535_v32, %v1401_v22  ;;  %v161_v35 = vpop.f32.mrb[5].mxu0 }
  0xe6   :  { %v162_v36 = vadd.f32 %v1401_v22, %v161_v35  ;;  %v1926_v35 = vmov 0.0  }
  0xe7   :  { %v205_v38 = vmax.f32 %v167_v34, 0.0  ;;  %v1924_v34 = vmov 0.0|0.0   ;;  %1603 = vmatprep.mubr.msk.f32.mxu0 %vm1925_vm7, %v1926_v35 }
  0xe8   :  { %v204_v40 = vmax.f32 %v162_v36, 0.0  ;;  %v1538_v41 = vpop.f32.mrb[6].mxu0  ;;  %1716 = vmatprep.subr.bf16.mxu1 %v1924_v34  ;;  %1720 = vmatprep.subr.bf16.mxu0 %v1924_v34  ;;  %v1414_v36 = vld [vmem:[%s2584_s3 + $0x1] ss:$0 sm:$0xff] }
  0xe9   :  { %v214_v42 = vmax.f32 %v202_v37, %v205_v38  ;;  %v171_v43 = vpop.f32.mrb[7].mxu0  ;;  %v177_v54 = vadd.f32 %v1538_v41, %v1401_v22 }
  0xea   :  { %v213_v44 = vmax.f32 %v201_v39, %v204_v40  ;;  %v172_v45 = vadd.f32 %v1401_v22, %v171_v43 }
  0xeb   :  { %v207_v2 = vmax.f32 %v177_v54, 0.0  ;;  %v467_v54 = vld [vmem:[%s2582_s2 + $0x250] sm:$0xff] }
  0xec   :  { %v1541_v46 = vpop.f32.mrb[8].mxu0  ;;  %v206_v49 = vmax.f32 %v172_v45, 0.0  ;;  %v461_v45 = vld [vmem:[%s2582_s2 + $0x10] sm:$0xff] }
  0xed   :  { %v187_v47 = vadd.f32 %v1541_v46, %v1401_v22  ;;  %v181_v48 = vpop.f32.mrb[9].mxu0  ;;  %v462_v46 = vld [vmem:[%s2582_s2 + $0x70] sm:$0xff] }
  0xee   :  { %v182_v51 = vadd.f32 %v1401_v22, %v181_v48  ;;  %v1721_v48 = vpack.c.bf16 %v462_v46, %v461_v45  ;;  %v663_v45 = vld [vmem:[%s2582_s2 + $0x1a0] sm:$0xff] }
  0xef   :  { %v209_v50 = vmax.f32 %v187_v47, 0.0  ;;  %v463_v47 = vld [vmem:[%s2582_s2 + $0xd0] sm:$0xff]  ;;  %v666_v46 = vld [vmem:[%s2582_s2 + $0x200] sm:$0xff] }
  0xf0   :  { %v1544_v55 = vpop.f32.mrb[10].mxu0  ;;  %v208_v62 = vmax.f32 %v182_v51, 0.0  ;;  %1722 = vmatpush3.bf16.msra.mxu0 %v1721_v48  ;;  %v465_v51 = vld [vmem:[%s2582_s2 + $0x190] sm:$0xff]  ;;  %v1419_v48 = vld [vmem:[%s2584_s3 + $0x2] ss:$0 sm:$0xff] }
  0xf1   :  { %v215_v57 = vmax.f32 %v206_v49, %v209_v50  ;;  %v197_v58 = vadd.f32 %v1544_v55, %v1401_v22  ;;  %v191_v59 = vpop.f32.mrb[11].mxu0  ;;  %v464_v49 = vld [vmem:[%s2582_s2 + $0x130] sm:$0xff]  ;;  %1723 = vmatprep.subr.bf16.mxu0 %v1924_v34  ;;  %v1727_v53 = vpack.c.bf16 %v466_v52, %v465_v51 }
  0xf2   :  { %v192_v60 = vadd.f32 %v1401_v22, %v191_v59  ;;  %v1724_v50 = vpack.c.bf16 %v464_v49, %v463_v47  ;;  %v468_v55 = vld [vmem:[%s2582_s2 + $0x2b0] sm:$0xff]  ;;  %v1766_v47 = vpack.c.bf16 %v666_v46, %v663_v45  ;;  %v1424_v45 = vld.sshfl [vmem:[%s2585_s1] sm:$0x3 pattern:$0x76325410] }
  0xf3   :  { %v218_v61 = vmax.f32 %v212_v33, %v215_v57  ;;  %v211_v63 = vmax.f32 %v197_v58, 0.0  ;;  %v1730_v56 = vpack.c.bf16 %v468_v55, %v467_v54  ;;  %v469_v57 = vld [vmem:[%s2582_s2 + $0x310] sm:$0xff]  ;;  %v877_v46 = vld [vmem:[%s2582_s2 + $0x40] sm:$0xff] }
  0xf4   :  { %v210_v3 = vmax.f32 %v192_v60, 0.0  ;;  %1725 = vmatpush3.bf16.msra.mxu0 %v1724_v50  ;;  %v470_v58 = vld [vmem:[%s2582_s2 + $0x370] sm:$0xff] }
  0xf5   :  { %v217_v5 = vmax.f32 %v208_v62, %v211_v63  ;;  %v235_v10 = vrot.slane %v218_v61, 3  ;;  %v224_v14 = vrot.slane %v218_v61, 1  ;;  %v247_v19 = vrot.slane %v218_v61, 4  ;;  %1726 = vmatprep.subr.bf16.mxu0 %v1924_v34  ;;  %v471_v60 = vld [vmem:[%s2582_s2 + $0x3d0] sm:$0xff] }
  0xf6   :  { %v216_v6 = vmax.f32 %v207_v2, %v210_v3  ;;  %v1733_v59 = vpack.c.bf16 %v470_v58, %v469_v57  ;;  %v473_v63 = vld [vmem:[%s2582_s2 + $0x490] sm:$0xff] }
  0xf7   :  { %v220_v7 = vmax.f32 %v214_v42, %v217_v5  ;;  %v1739_v1 = vpack.c.bf16 %v474_v0, %v473_v63  ;;  %v475_v2 = vld [vmem:[%s2582_s2 + $0x550] sm:$0xff]  ;;  %v555_v5 = vld [vmem:[%s2582_s2 + $0x18] sm:$0xff]  ;;  %v673_v63 = vld [vmem:[%s2582_s2 + $0x2c8] sm:$0xff] }
  0xf8   :  { %v219_v8 = vmax.f32 %v213_v44, %v216_v6  ;;  %v365_v44 = vld [vmem:[%s2582_s2 + $0x58] sm:$0xff]  ;;  %1728 = vmatpush3.bf16.msra.mxu0 %v1727_v53  ;;  %v476_v3 = vld [vmem:[%s2582_s2 + $0x5b0] sm:$0xff] }
  0xf9   :  { %v238_v13 = vrot.slane %v220_v7, 3  ;;  %v250_v18 = vrot.slane %v220_v7, 4  ;;  %1729 = vmatprep.subr.bf16.mxu0 %v1924_v34  ;;  %v1742_v4 = vpack.c.bf16 %v476_v3, %v475_v2  ;;  %v556_v6 = vld [vmem:[%s2582_s2 + $0x78] sm:$0xff]  ;;  %v653_v49 = vld [vmem:[%s2582_s2 + $0x30] sm:$0xff]  ;;  %v672_v2 = vld [vmem:[%s2582_s2 + $0x2c0] sm:$0xff] }
  0xfa   :  { %v225_v9 = vrot.slane %v219_v8, 1  ;;  %v236_v11 = vrot.slane %v219_v8, 3  ;;  %v248_v16 = vrot.slane %v219_v8, 4  ;;  %v557_v7 = vld [vmem:[%s2582_s2 + $0xd8] sm:$0xff]  ;;  %v656_v50 = vld [vmem:[%s2582_s2 + $0x90] sm:$0xff] }
  0xfb   :  { %v1789_v54 = vpack.c.bf16 %v656_v50, %v653_v49  ;;  %v662_v57 = vld [vmem:[%s2582_s2 + $0x150] sm:$0xff]  ;;  %v1420_v49 = vld [vmem:[%s2584_s3 + $0x3] ss:$0 sm:$0xff] }
  0xfc   :  { %229 = vrot.lane.b32.xlu0 %v225_v9, %s1921_s8  ;;  %v237_v12 = vsel %vm234_vm1, %v235_v10, %v236_v11  ;;  %v226_v15 = vsel %vm223_vm2, %v224_v14, %v225_v9  ;;  %v239_v17 = vsel %vm234_vm1, %v236_v11, %v238_v13  ;;  %v249_v20 = vsel %vm246_vm3, %v247_v19, %v248_v16  ;;  %v558_v9 = vld [vmem:[%s2582_s2 + $0x138] sm:$0xff]  ;;  %v671_v3 = vld [vmem:[%s2582_s2 + $0x270] sm:$0xff] }
  0xfd   :  { %240 = vrot.lane.b32.xlu1 %v237_v12, %s1922_s9  ;;  %v251_v21 = vsel %vm246_vm3, %v248_v16, %v250_v18  ;;  %1731 = vmatpush3.bf16.msra.mxu0 %v1730_v56  ;;  %v1748_v10 = vpack.c.bf16 %v558_v9, %v557_v7  ;;  %v559_v11 = vld [vmem:[%s2582_s2 + $0x198] sm:$0xff]  ;;  %v659_v56 = vld [vmem:[%s2582_s2 + $0xf0] sm:$0xff]  ;;  %v676_v7 = vld [vmem:[%s2582_s2 + $0x328] sm:$0xff]  ;;  %vm1110_vm2 = vcmask 916480   ;;  %vm1133_vm3 = vcmask 195584  }
  0xfe   :  { %1732 = vmatprep.subr.bf16.mxu0 %v1924_v34  ;;  %v560_v12 = vld [vmem:[%s2582_s2 + $0x1f8] sm:$0xff]  ;;  %v1792_v58 = vpack.c.bf16 %v662_v57, %v659_v56 }
  0xff   :  { %v878_v56 = vld [vmem:[%s2582_s2 + $0x98] sm:$0xff] }
 0x100   :  { %227 = vrot.lane.b32.xlu0 %v226_v15, %s1921_s8 }
 0x101   :  { %242 = vrot.lane.b32.xlu1 %v239_v17, %s1922_s9  ;;  %1734 = vmatpush3.bf16.msra.mxu0 %v1733_v59  ;;  %v1751_v17 = vpack.c.bf16 %v560_v12, %v559_v11  ;;  %v665_v59 = vld [vmem:[%s2582_s2 + $0x1b0] sm:$0xff]  ;;  %v678_v11 = vld [vmem:[%s2582_s2 + $0x380] sm:$0xff] }
 0x102   :  { %1735 = vmatprep.subr.bf16.mxu0 %v1924_v34  ;;  %v677_v12 = vld [vmem:[%s2582_s2 + $0x330] sm:$0xff] }
 0x104   :  { %252 = vrot.lane.b32.xlu0 %v249_v20, %s1923_s10 }
 0x105   :  { %254 = vrot.lane.b32.xlu1 %v251_v21, %s1923_s10  ;;  %s1929_s10 = smov 96  }
 0x16e   :  { %v230_v22 = vpop.permute.xlu0 %229 }
 0x16f   :  { %v241_v23 = vpop.permute.xlu1 %240  ;;  %v259_v27 = vsel %vm38_vm0, %v219_v8, %v230_v22  ;;  %v1745_v8 = vpack.c.bf16 %v556_v6, %v555_v5  ;;  %v674_v5 = vld [vmem:[%s2582_s2 + $0x2d0] sm:$0xff] }
 0x170   :  { %v1798_v6 = vpack.c.bf16 %v674_v5, %v671_v3  ;;  %v887_v5 = vld [vmem:[%s2582_s2 + $0x220] sm:$0xff] }
 0x172   :  { %v228_v24 = vpop.permute.xlu0 %227 }
 0x173   :  { %v258_v25 = vsel %vm38_vm0, %v218_v61, %v228_v24  ;;  %v243_v26 = vpop.permute.xlu1 %242  ;;  %v472_v61 = vld [vmem:[%s2582_s2 + $0x430] sm:$0xff] }
 0x174   :  { %v261_v29 = vsel %vm260_vm4, %v258_v25, %v241_v23  ;;  %v262_v30 = vsel %vm260_vm4, %v259_v27, %v243_v26  ;;  %v1736_v62 = vpack.c.bf16 %v472_v61, %v471_v60  ;;  %v561_v25 = vld [vmem:[%s2582_s2 + $0x258] sm:$0xff]  ;;  %v668_v60 = vld [vmem:[%s2582_s2 + $0x210] sm:$0xff] }
 0x175   :  { %v562_v26 = vld [vmem:[%s2582_s2 + $0x2b8] sm:$0xff]  ;;  %v1795_v61 = vpack.c.bf16 %v668_v60, %v665_v59  ;;  %v883_v59 = vld [vmem:[%s2582_s2 + $0x160] sm:$0xff] }
 0x176   :  { %v253_v28 = vpop.permute.xlu0 %252  ;;  %1737 = vmatpush3.bf16.msra.mxu0 %v1736_v62  ;;  %v1754_v27 = vpack.c.bf16 %v562_v26, %v561_v25  ;;  %v670_v62 = vld [vmem:[%s2582_s2 + $0x268] sm:$0xff] }
 0x177   :  { %v255_v31 = vpop.permute.xlu1 %254  ;;  %v264_v32 = vsel %vm263_vm5, %v261_v29, %v253_v28  ;;  %1738 = vmatprep.subr.bf16.mxu0 %v1924_v34  ;;  %v652_v28 = vld [vmem:[%s2582_s2 + $0x28] sm:$0xff]  ;;  %v1768_v0 = vpack.c.bf16 %v673_v63, %v670_v62 }
 0x178   :  { %v265_v33 = vsel %vm263_vm5, %v262_v30, %v255_v31  ;;  %1561 = vmatprep.mubr.msk.f32.mxu1 %vm281_vm6, %v264_v32  ;;  %v655_v29 = vld [vmem:[%s2582_s2 + $0x88] sm:$0xff]  ;;  %v651_v30 = vld [vmem:[%s2582_s2 + $0x20] sm:$0xff]  ;;  %vm1136_vm5 = vcmask 451584  }
 0x179   :  { %1562 = vmatmul.mubr.msk.f32.vlgmr.msra.gmra.mrb[0].mxu1 %vm281_vm6, %v265_v33  ;;  %v1756_v31 = vpack.c.bf16 %v655_v29, %v652_v28  ;;  %v654_v32 = vld [vmem:[%s2582_s2 + $0x80] sm:$0xff]  ;;  %v688_v25 = vld [vmem:[%s2582_s2 + $0x4a8] sm:$0xff] }
 0x17a   :  { %1568 = vmatprep.mubr.msk.f32.mxu1 %vm1925_vm7, %v1926_v35  ;;  %1740 = vmatpush3.bf16.msra.mxu0 %v1739_v1  ;;  %v1758_v33 = vpack.c.bf16 %v654_v32, %v651_v30  ;;  %v669_v1 = vld [vmem:[%s2582_s2 + $0x260] sm:$0xff]  ;;  %v691_v26 = vld [vmem:[%s2582_s2 + $0x508] sm:$0xff]  ;;  %v689_v30 = vld [vmem:[%s2582_s2 + $0x4b0] sm:$0xff] }
 0x17b   :  { %1741 = vmatprep.subr.bf16.mxu0 %v1924_v34  ;;  %v687_v28 = vld [vmem:[%s2582_s2 + $0x4a0] sm:$0xff]  ;;  %v692_v32 = vld [vmem:[%s2582_s2 + $0x510] sm:$0xff] }
 0x17c   :  { %v690_v29 = vld [vmem:[%s2582_s2 + $0x500] sm:$0xff] }
 0x17e   :  { %1743 = vmatpush3.bf16.msra.mxu0 %v1742_v4  ;;  %v1770_v4 = vpack.c.bf16 %v672_v2, %v669_v1  ;;  %v880_v1 = vld [vmem:[%s2582_s2 + $0xf8] sm:$0xff] }
 0x17f   :  { %1757 = vmatprep.subr.bf16.mxu0 %v1756_v31  ;;  %v1782_v31 = vpack.c.bf16 %v690_v29, %v687_v28  ;;  %v882_v2 = vld [vmem:[%s2582_s2 + $0x158] sm:$0xff]  ;;  %v901_v29 = vld [vmem:[%s2582_s2 + $0x4c0] sm:$0xff] }
 0x24c   :  { %v1563_v37 = vpop.f32.mrb[0].mxu1 }
 0x24d   :  { %v360_v38 = vadd.f32 %v1563_v37, %v1414_v36  ;;  %v354_v39 = vpop.f32.mrb[1].mxu1  ;;  %v661_v37 = vld [vmem:[%s2582_s2 + $0x148] sm:$0xff] }
 0x24e   :  { %v355_v40 = vadd.f32 %v1414_v36, %v354_v39  ;;  %v658_v36 = vld [vmem:[%s2582_s2 + $0xe8] sm:$0xff] }
 0x24f   :  { %v364_v41 = vmax.f32 %v360_v38, 0.0  ;;  %v657_v38 = vld [vmem:[%s2582_s2 + $0xe0] sm:$0xff]  ;;  %v1760_v39 = vpack.c.bf16 %v661_v37, %v658_v36  ;;  %v694_v36 = vld [vmem:[%s2582_s2 + $0x568] sm:$0xff] }
 0x250   :  { %v363_v42 = vmax.f32 %v355_v40, 0.0  ;;  %v660_v40 = vld [vmem:[%s2582_s2 + $0x140] sm:$0xff]  ;;  %v697_v37 = vld [vmem:[%s2582_s2 + $0x5c8] sm:$0xff] }
 0x252   :  { %v1717_v43 = vpack.c.bf16 %v364_v41, %v363_v42  ;;  %v1762_v41 = vpack.c.bf16 %v660_v40, %v657_v38  ;;  %v664_v42 = vld [vmem:[%s2582_s2 + $0x1a8] sm:$0xff]  ;;  %v1784_v38 = vpack.c.bf16 %v697_v37, %v694_v36  ;;  %v696_v40 = vld [vmem:[%s2582_s2 + $0x5c0] sm:$0xff] }
 0x253   :  { %v905_v37 = vld [vmem:[%s2582_s2 + $0x580] sm:$0xff] }
 0x254   :  { %1719 = vmatpush3.bf16.msk.msra.mxu1 %vm1718_vm10, %v1717_v43  ;;  %v667_v43 = vld [vmem:[%s2582_s2 + $0x208] sm:$0xff]  ;;  %vm1355_vm10 = vcmask 719872  }
 0x255   :  { %1744 = vmatprep.subr.bf16.mxu1 %v1924_v34 }
 0x257   :  { %1569 = vmatmul.mubr.msk.f32.vlgmr.msra.gmra.mrb[2].mxu1 %vm366_vm11, %v365_v44  ;;  %v1764_v44 = vpack.c.bf16 %v667_v43, %v664_v42  ;;  %v698_v43 = vld [vmem:[%s2582_s2 + $0x5d0] sm:$0xff]  ;;  %vm1372_vm11 = vcmask 982016  }
 0x258   :  { %1622 = vmatprep.mubr.msk.f32.mxu1 %vm1925_vm7, %v1926_v35  ;;  %1746 = vmatpush3.bf16.msra.mxu1 %v1745_v8  ;;  %v679_v8 = vld [vmem:[%s2582_s2 + $0x388] sm:$0xff] }
 0x259   :  { %1747 = vmatprep.subr.bf16.mxu1 %v1924_v34  ;;  %v1772_v9 = vpack.c.bf16 %v679_v8, %v676_v7  ;;  %v884_v8 = vld [vmem:[%s2582_s2 + $0x1b8] sm:$0xff] }
 0x25c   :  { %1749 = vmatpush3.bf16.msra.mxu1 %v1748_v10  ;;  %v675_v10 = vld [vmem:[%s2582_s2 + $0x320] sm:$0xff] }
 0x25d   :  { %1750 = vmatprep.subr.bf16.mxu1 %v1924_v34 }
 0x260   :  { %1752 = vmatpush3.bf16.msra.mxu1 %v1751_v17  ;;  %v685_v17 = vld [vmem:[%s2582_s2 + $0x448] sm:$0xff] }
 0x261   :  { %1753 = vmatprep.subr.bf16.mxu1 %v1924_v34 }
 0x264   :  { %1755 = vmatpush3.bf16.msra.mxu1 %v1754_v27  ;;  %v1780_v27 = vpack.c.bf16 %v691_v26, %v688_v25  ;;  %v896_v26 = vld [vmem:[%s2582_s2 + $0x3f8] sm:$0xff] }
 0x265   :  { %1788 = vmatprep.subr.bf16.mxu1 %v1924_v34 }
 0x32a   :  { %v440_v13 = vpop.f32.mrb[2].mxu1 }
 0x32b   :  { %v1570_v14 = vpop.f32.mrb[3].mxu1  ;;  %v445_v15 = vrot.slane %v440_v13, 2  ;;  %v449_v16 = vrot.slane %v440_v13, 4  ;;  %v453_v18 = vrot.slane %v440_v13, 6 }
 0x32c   :  { %v680_v14 = vld [vmem:[%s2582_s2 + $0x390] sm:$0xff] }
 0x32d   :  { %446 = vrot.lane.b32.xlu0 %v445_v15, %s1922_s9  ;;  %450 = vrot.lane.b32.xlu1 %v449_v16, %s1928_s7  ;;  %v1801_v15 = vpack.c.bf16 %v680_v14, %v677_v12  ;;  %v682_v16 = vld [vmem:[%s2582_s2 + $0x3e8] sm:$0xff]  ;;  %v891_v12 = vld [vmem:[%s2582_s2 + $0x2e0] sm:$0xff] }
 0x32e   :  { %v888_v14 = vld [vmem:[%s2582_s2 + $0x278] sm:$0xff] }
 0x331   :  { %454 = vrot.lane.b32.xlu0 %v453_v18, %s1929_s10  ;;  %v1776_v18 = vpack.c.bf16 %v685_v17, %v682_v16  ;;  %872 = vrot.lane.b32.xlu1 %v1424_v45, %s1928_s7  ;;  %v893_v17 = vld [vmem:[%s2582_s2 + $0x340] sm:$0xff] }
 0x39f   :  { %v447_v19 = vpop.permute.xlu0 %446  ;;  %v451_v21 = vpop.permute.xlu1 %450 }
 0x3a0   :  { %v457_v20 = vsel %vm260_vm4, %v440_v13, %v447_v19  ;;  %v1774_v13 = vpack.c.bf16 %v678_v11, %v675_v10  ;;  %v681_v19 = vld [vmem:[%s2582_s2 + $0x3e0] sm:$0xff]  ;;  %vm1255_vm4 = vcmask 457728  }
 0x3a1   :  { %v458_v22 = vsel %vm281_vm6, %v457_v20, %v451_v21  ;;  %v684_v20 = vld [vmem:[%s2582_s2 + $0x440] sm:$0xff]  ;;  %v683_v21 = vld [vmem:[%s2582_s2 + $0x3f0] sm:$0xff] }
 0x3a2   :  { %v889_v11 = vld [vmem:[%s2582_s2 + $0x280] sm:$0xff] }
 0x3a3   :  { %v455_v23 = vpop.permute.xlu0 %454 }
 0x3a4   :  { %v460_v24 = vsel %vm459_vm12, %v458_v22, %v455_v23  ;;  %v1778_v22 = vpack.c.bf16 %v684_v20, %v681_v19  ;;  %v686_v23 = vld [vmem:[%s2582_s2 + $0x450] sm:$0xff]  ;;  %v892_v20 = vld [vmem:[%s2582_s2 + $0x338] sm:$0xff] }
 0x3a5   :  { %1604 = vmatmul.mubr.f32.vlgmr.msra.gmra.mrb[12].mxu0 %v460_v24  ;;  %v1804_v24 = vpack.c.bf16 %v686_v23, %v683_v21  ;;  %v894_v21 = vld [vmem:[%s2582_s2 + $0x398] sm:$0xff]  ;;  %v897_v23 = vld [vmem:[%s2582_s2 + $0x400] sm:$0xff] }
 0x3a6   :  { %780 = vmatprep.mubr.f32.mxu0 %v1926_v35  ;;  %1759 = vmatpush1.bf16.msra.mxu0 %v1758_v33  ;;  %v1807_v33 = vpack.c.bf16 %v692_v32, %v689_v30  ;;  %v903_v30 = vld [vmem:[%s2582_s2 + $0x520] sm:$0xff]  ;;  %v900_v32 = vld [vmem:[%s2582_s2 + $0x4b8] sm:$0xff] }
 0x3a7   :  { %1761 = vmatprep.subr.bf16.mxu0 %v1760_v39  ;;  %v693_v39 = vld [vmem:[%s2582_s2 + $0x560] sm:$0xff] }
 0x3a8   :  { %v1786_v42 = vpack.c.bf16 %v696_v40, %v693_v39  ;;  %v904_v40 = vld [vmem:[%s2582_s2 + $0x578] sm:$0xff] }
 0x3aa   :  { %1763 = vmatpush1.bf16.msra.mxu0 %v1762_v41  ;;  %v695_v41 = vld [vmem:[%s2582_s2 + $0x570] sm:$0xff] }
 0x3ab   :  { %1765 = vmatprep.subr.bf16.mxu0 %v1764_v44  ;;  %v1810_v44 = vpack.c.bf16 %v698_v43, %v695_v41  ;;  %v906_v41 = vld [vmem:[%s2582_s2 + $0x5d8] sm:$0xff]  ;;  %v701_v43 = vlaneseq }
 0x3ae   :  { %1767 = vmatpush1.bf16.msra.mxu0 %v1766_v47  ;;  %v879_v47 = vld [vmem:[%s2582_s2 + $0xa0] sm:$0xff] }
 0x3af   :  { %1769 = vmatprep.subr.bf16.mxu0 %v1768_v0 }
 0x3b2   :  { %1771 = vmatpush1.bf16.msra.mxu0 %v1770_v4  ;;  %v885_v4 = vld [vmem:[%s2582_s2 + $0x1c0] sm:$0xff] }
 0x3b3   :  { %1773 = vmatprep.subr.bf16.mxu0 %v1772_v9  ;;  %v1820_v7 = vpack.c.bf16 %v887_v5, %v885_v4  ;;  %v886_v9 = vld [vmem:[%s2582_s2 + $0x218] sm:$0xff] }
 0x3b4   :  { %v1822_v10 = vpack.c.bf16 %v886_v9, %v884_v8 }
 0x3b6   :  { %1775 = vmatpush1.bf16.msra.mxu0 %v1774_v13  ;;  %v1824_v13 = vpack.c.bf16 %v891_v12, %v889_v11  ;;  %v1004_v12 = vld [vmem:[%s2585_s1] sm:$0x3] }
 0x3b7   :  { %1777 = vmatprep.subr.bf16.mxu0 %v1776_v18  ;;  %v895_v18 = vld [vmem:[%s2582_s2 + $0x3a0] sm:$0xff] }
 0x3b8   :  { %v1828_v19 = vpack.c.bf16 %v895_v18, %v893_v17 }
 0x3ba   :  { %1779 = vmatpush1.bf16.msra.mxu0 %v1778_v22  ;;  %v1830_v22 = vpack.c.bf16 %v894_v21, %v892_v20 }
 0x3bb   :  { %1781 = vmatprep.subr.bf16.mxu0 %v1780_v27  ;;  %v898_v27 = vld [vmem:[%s2582_s2 + $0x458] sm:$0xff] }
 0x3bc   :  { %v1834_v28 = vpack.c.bf16 %v898_v27, %v896_v26  ;;  %v1157_v27 = vld [vmem:[%s2582_s2 + $0x168] sm:$0xff] }
 0x3be   :  { %1783 = vmatpush1.bf16.msra.mxu0 %v1782_v31  ;;  %v1836_v31 = vpack.c.bf16 %v903_v30, %v901_v29  ;;  %v1158_v29 = vld [vmem:[%s2582_s2 + $0x1c8] sm:$0xff] }
 0x3bf   :  { %1785 = vmatprep.subr.bf16.mxu0 %v1784_v38  ;;  %v907_v38 = vld [vmem:[%s2582_s2 + $0x5e0] sm:$0xff]  ;;  %v1159_v30 = vld [vmem:[%s2582_s2 + $0x228] sm:$0xff] }
 0x3c0   :  { %v1840_v39 = vpack.c.bf16 %v907_v38, %v905_v37 }
 0x3c2   :  { %1787 = vmatpush1.bf16.msra.mxu0 %v1786_v42  ;;  %v1842_v42 = vpack.c.bf16 %v906_v41, %v904_v40 }
 0x478   :  { %v550_v51 = vpop.f32.mrb[12].mxu0 }
 0x479   :  { %v551_v52 = vadd.f32 %v1419_v48, %v550_v51  ;;  %v1605_v53 = vpop.f32.mrb[13].mxu0  ;;  %v1812_v48 = vpack.c.bf16 %v879_v47, %v877_v46  ;;  %v2432_v46 = vld [vmem:[%s2584_s3 + $0x4] sm:$0x7] }
 0x47b   :  { %v554_v55 = vmax.f32 %v551_v52, 0.0  ;;  %1813 = vmatprep.subr.bf16.mxu0 %v1812_v48 }
 0x47d   :  { %1623 = vmatmul.mubr.msk.f32.vlgmr.msra.gmra.mrb[4].mxu1 %vm281_vm6, %v554_v55  ;;  %v876_v55 = vld [vmem:[%s2582_s2 + $0x38] sm:$0xff] }
 0x47e   :  { %1790 = vmatpush3.bf16.msra.mxu1 %v1789_v54  ;;  %1657 = vmatprep.mubr.msk.f32.mxu1 %vm1925_vm7, %v1926_v35  ;;  %v1814_v62 = vpack.c.bf16 %v878_v56, %v876_v55  ;;  %v873_v56 = vpop.permute.xlu1 %872 }
 0x47f   :  { %1791 = vmatprep.subr.bf16.mxu1 %v1924_v34 }
 0x482   :  { %1793 = vmatpush3.bf16.msra.mxu1 %v1792_v58  ;;  %v881_v58 = vld [vmem:[%s2582_s2 + $0x100] sm:$0xff] }
 0x483   :  { %1794 = vmatprep.subr.bf16.mxu1 %v1924_v34  ;;  %v1816_v0 = vpack.c.bf16 %v883_v59, %v881_v58 }
 0x486   :  { %1796 = vmatpush3.bf16.msra.mxu1 %v1795_v61  ;;  %v649_v61 = vld [vmem:[%s2585_s1 + $0x2] sm:$0x3] }
 0x487   :  { %1797 = vmatprep.subr.bf16.mxu1 %v1924_v34 }
 0x48a   :  { %1799 = vmatpush3.bf16.msra.mxu1 %v1798_v6  ;;  %v1818_v6 = vpack.c.bf16 %v882_v2, %v880_v1 }
 0x48b   :  { %1800 = vmatprep.subr.bf16.mxu1 %v1924_v34 }
 0x48e   :  { %1802 = vmatpush3.bf16.msra.mxu1 %v1801_v15  ;;  %v890_v15 = vld [vmem:[%s2582_s2 + $0x2d8] sm:$0xff] }
 0x48f   :  { %1803 = vmatprep.subr.bf16.mxu1 %v1924_v34  ;;  %v1826_v16 = vpack.c.bf16 %v890_v15, %v888_v14 }
 0x492   :  { %1805 = vmatpush3.bf16.msra.mxu1 %v1804_v24  ;;  %v899_v24 = vld [vmem:[%s2582_s2 + $0x460] sm:$0xff] }
 0x493   :  { %1806 = vmatprep.subr.bf16.mxu1 %v1924_v34  ;;  %v1832_v25 = vpack.c.bf16 %v899_v24, %v897_v23  ;;  %v1154_v23 = vld [vmem:[%s2582_s2 + $0x48] sm:$0xff] }
 0x494   :  { %v1155_v24 = vld [vmem:[%s2582_s2 + $0xa8] sm:$0xff] }
 0x495   :  { %v1845_v26 = vpack.c.bf16 %v1155_v24, %v1154_v23 }
 0x496   :  { %1808 = vmatpush3.bf16.msra.mxu1 %v1807_v33  ;;  %v902_v33 = vld [vmem:[%s2582_s2 + $0x518] sm:$0xff] }
 0x497   :  { %1809 = vmatprep.subr.bf16.mxu1 %v1924_v34  ;;  %v1838_v36 = vpack.c.bf16 %v902_v33, %v900_v32  ;;  %v1160_v32 = vld [vmem:[%s2582_s2 + $0x288] sm:$0xff] }
 0x498   :  { %v1161_v33 = vld [vmem:[%s2582_s2 + $0x2e8] sm:$0xff] }
 0x49a   :  { %1811 = vmatpush3.bf16.msra.mxu1 %v1810_v44  ;;  %v2426_v44 = vshrl.u32 %v701_v43, 7 }
 0x49b   :  { %1844 = vmatprep.subr.bf16.mxu1 %v1924_v34 }
 0x49c   :  { %v703_v45 = vsub.s32 0, %v2426_v44  ;;  %v707_v2 = vsub.s32 1, %v2426_v44 }
 0x49e   :  { %v704_v47 = vrot.slane %v2432_v46, %v703_v45 }
 0x550   :  { %v639_v50 = vpop.f32.mrb[4].mxu1 }
 0x551   :  { %v640_v51 = vadd.f32 %v1420_v49, %v639_v50  ;;  %v1624_v52 = vpop.f32.mrb[5].mxu1 }
 0x553   :  { %v644_v53 = vmin.f32 %v640_v51, 0.0  ;;  %vm643_vm13 = vcmp.gt.f32.partialorder %v640_v51, 0.0 }
 0x555   :  { %v645_v54 = vmul.f32 1.442695, %v644_v53 }
 0x557   :  { %1883 = vpow2.f32 %v645_v54 }
 0x561   :  { %v1884_v57 = vpop.eup %1883 }
 0x562   :  { %v1422_v60 = vadd.f32 -1.0, %v1884_v57 }
 0x564   :  { %v648_v63 = vsel %vm643_vm13, %v640_v51, %v1422_v60  ;;  %v908_v60 = vld [vmem:[%s2584_s3 + $0x7] sm:$0x3] }
 0x565   :  { %v650_v3 = vsel %vm281_vm6, %v648_v63, %v649_v61  ;;  %v913_v61 = vrot.slane %v908_v60, %v703_v45  ;;  %v708_v45 = vrot.slane %v2432_v46, %v707_v2 }
 0x566   :  { %781 = vmatmul.mubr.f32.vlgmr.msra.gmra.mrb[14].mxu0 %v650_v3  ;;  %1658 = vmatmul.mubr.f32.vlgmr.msra.gmra.mrb[6].mxu1 %v650_v3  ;;  %v917_v3 = vrot.slane %v908_v60, %v707_v2 }
 0x567   :  { %1815 = vmatpush1.bf16.msra.mxu0 %v1814_v62  ;;  %984 = vmatprep.mubr.f32.mxu0 %v1926_v35 }
 0x568   :  { %1817 = vmatprep.subr.bf16.mxu0 %v1816_v0  ;;  %1676 = vmatprep.mubr.msk.f32.mxu1 %vm1925_vm7, %v1926_v35 }
 0x569   :  { %1846 = vmatpush3.bf16.msra.mxu1 %v1845_v26  ;;  %v1246_v26 = vld [vmem:[%s2582_s2 + $0x230] sm:$0xff] }
 0x56a   :  { %1847 = vmatprep.subr.bf16.mxu1 %v1924_v34 }
 0x56b   :  { %1819 = vmatpush1.bf16.msra.mxu0 %v1818_v6 }
 0x56c   :  { %1821 = vmatprep.subr.bf16.mxu0 %v1820_v7 }
 0x56f   :  { %1823 = vmatpush1.bf16.msra.mxu0 %v1822_v10 }
 0x570   :  { %1825 = vmatprep.subr.bf16.mxu0 %v1824_v13 }
 0x573   :  { %1827 = vmatpush1.bf16.msra.mxu0 %v1826_v16 }
 0x574   :  { %1829 = vmatprep.subr.bf16.mxu0 %v1828_v19 }
 0x577   :  { %1831 = vmatpush1.bf16.msra.mxu0 %v1830_v22 }
 0x578   :  { %1833 = vmatprep.subr.bf16.mxu0 %v1832_v25  ;;  %v1156_v25 = vld [vmem:[%s2582_s2 + $0x108] sm:$0xff] }
 0x57b   :  { %1835 = vmatpush1.bf16.msra.mxu0 %v1834_v28  ;;  %v1848_v28 = vpack.c.bf16 %v1157_v27, %v1156_v25  ;;  %v1245_v25 = vld [vmem:[%s2582_s2 + $0x1d0] sm:$0xff] }
 0x57c   :  { %1837 = vmatprep.subr.bf16.mxu0 %v1836_v31  ;;  %v1851_v31 = vpack.c.bf16 %v1159_v30, %v1158_v29  ;;  %v1863_v27 = vpack.c.bf16 %v1246_v26, %v1245_v25 }
 0x57d   :  { %1849 = vmatpush3.bf16.msra.mxu1 %v1848_v28  ;;  %v711_v28 = vsub.s32 2, %v2426_v44 }
 0x57e   :  { %1850 = vmatprep.subr.bf16.mxu1 %v1924_v34 }
 0x57f   :  { %1839 = vmatpush1.bf16.msra.mxu0 %v1838_v36  ;;  %v1854_v36 = vpack.c.bf16 %v1161_v33, %v1160_v32  ;;  %v712_v29 = vrot.slane %v2432_v46, %v711_v28 }
 0x580   :  { %1841 = vmatprep.subr.bf16.mxu0 %v1840_v39 }
 0x581   :  { %1852 = vmatpush3.bf16.msra.mxu1 %v1851_v31 }
 0x582   :  { %1853 = vmatprep.subr.bf16.mxu1 %v1924_v34 }
 0x583   :  { %1843 = vmatpush1.bf16.msra.mxu0 %v1842_v42 }
 0x585   :  { %1855 = vmatpush3.bf16.msra.mxu1 %v1854_v36 }
 0x586   :  { %1856 = vmatprep.subr.bf16.mxu1 %v1924_v34 }
 0x639   :  { %v782_v48 = vpop.f32.mrb[14].mxu0  ;;  %v2435_v49 = vpop.f32.mrb[6].mxu1 }
 0x63a   :  { %v2437_v50 = vadd.f32 %v782_v48, %v704_v47  ;;  %v2439_v51 = vpop.f32.mrb[15].mxu0  ;;  %v1659_v52 = vpop.f32.mrb[7].mxu1  ;;  %v1930_v47 = vmov 1983009808   ;;  %v854_v30 = vadd.f32 %v2435_v49, %v712_v29 }
 0x63b   :  { %v1144_v48 = vunpack.c.l.s4 %v1930_v47  ;;  %v785_v52 = vadd.f32 %v2439_v51, %v708_v45  ;;  %v1432_v51 = vld.sshfl [vmem:[%s2585_s1 + $0x4] sm:$0x3 pattern:$0x76325410] }
 0x63c   :  { %v858_v53 = vmin.f32 %v2437_v50, 0.0  ;;  %vm857_vm14 = vcmp.gt.f32.partialorder %v2437_v50, 0.0  ;;  %v1431_v31 = vmul.f32 -1.442695, %v854_v30 }
 0x63e   :  { %v859_v54 = vmul.f32 1.442695, %v858_v53  ;;  %v1145_v53 = vunpack.c.0.s8 %v1144_v48 }
 0x640   :  { %1885 = vpow2.f32 %v859_v54  ;;  %v2493_v54 = vsub.s32 %v1145_v53, %v2426_v44 }
 0x64a   :  { %v1886_v55 = vpop.eup %1885 }
 0x64b   :  { %v1423_v57 = vadd.f32 -1.0, %v1886_v55 }
 0x64d   :  { %v862_v58 = vsel %vm857_vm14, %v2437_v50, %v1423_v57 }
 0x64e   :  { %v875_v59 = vsel %vm281_vm6, %v862_v58, %v873_v56 }
 0x64f   :  { %985 = vmatmul.mubr.f32.vlgmr.msra.gmra.mrb[16].mxu0 %v875_v59  ;;  %v1429_v59 = vmul.f32 -1.442695, %v2437_v50  ;;  %v1430_v50 = vmul.f32 -1.442695, %v785_v52 }
 0x722   :  { %v986_v62 = vpop.f32.mrb[16].mxu0 }
 0x723   :  { %v987_v63 = vadd.f32 %v986_v62, %v913_v61  ;;  %v988_v0 = vpop.f32.mrb[17].mxu0  ;;  %v1141_v62 = vld [vmem:[%s2585_s1 + $0x2] sm:$0x3]  ;;  %s1933_s1 = smov 112  }
 0x724   :  { %v989_v4 = vadd.f32 %v988_v0, %v917_v3 }
 0x725   :  { %v1425_v1 = vmul.f32 -1.442695, %v987_v63 }
 0x726   :  { %v1426_v10 = vmul.f32 -1.442695, %v989_v4 }
 0x727   :  { %1887 = vpow2.f32 %v1425_v1 }
 0x728   :  { %1889 = vtanh.f32 %v989_v4 }
 0x731   :  { %v1888_v5 = vpop.eup %1887 }
 0x732   :  { %v994_v6 = vadd.f32 1.0, %v1888_v5  ;;  %v1890_v7 = vpop.eup %1889 }
 0x734   :  { %1891 = vrcp.f32 %v994_v6 }
 0x735   :  { %1893 = vpow2.f32 %v1426_v10 }
 0x73e   :  { %v1892_v8 = vpop.eup %1891 }
 0x73f   :  { %v1006_v9 = vmul.f32 %v1892_v8, %v1890_v7  ;;  %v1894_v11 = vpop.eup %1893  ;;  %v1005_v14 = vmul.f32 %v1892_v8, %v1004_v12 }
 0x740   :  { %v1001_v13 = vadd.f32 1.0, %v1894_v11 }
 0x741   :  { %1008 = vrot.lane.b32.xlu0 %v1006_v9, %s1928_s7 }
 0x742   :  { %1895 = vrcp.f32 %v1001_v13 }
 0x74c   :  { %v1896_v17 = vpop.eup %1895 }
 0x7b3   :  { %v1009_v15 = vpop.permute.xlu0 %1008 }
 0x7b4   :  { %v2453_v16 = vadd.f32 %v1009_v15, %v1005_v14  ;;  %v1241_v15 = vld [vmem:[%s2582_s2 + $0x50] sm:$0xff] }
 0x7b6   :  { %1897 = vtanh.f32 %v2453_v16 }
 0x7c0   :  { %v1898_v18 = vpop.eup %1897 }
 0x7c1   :  { %v2456_v19 = vmul.f32 %v1898_v18, %v1896_v17  ;;  %v1242_v17 = vld [vmem:[%s2582_s2 + $0xb0] sm:$0xff] }
 0x7c2   :  { %v1243_v18 = vld [vmem:[%s2582_s2 + $0x110] sm:$0xff] }
 0x7c3   :  { %v1014_v20 = vmul.f32 %v2456_v19, %v2456_v19 }
 0x7c5   :  { %1016 = vrot.lane.b32.xlu1 %v1014_v20, %s1928_s7  ;;  %v1857_v20 = vpack.c.bf16 %v1242_v17, %v1241_v15 }
 0x837   :  { %v1017_v21 = vpop.permute.xlu1 %1016 }
 0x838   :  { %v1020_v22 = vsel %vm1019_vm15, %v1017_v21, 0.0  ;;  %v1244_v21 = vld [vmem:[%s2582_s2 + $0x170] sm:$0xff] }
 0x839   :  { %1021 = vadd.xlane.f32.xlu0 %v1020_v22  ;;  %v1860_v24 = vpack.c.bf16 %v1244_v21, %v1243_v18 }
 0x8c6   :  { %v1022_v37 = vpop.xlane.xlu0 %1021 }
 0x8c7   :  { %1899 = vrsqrt.f32 %v1022_v37  ;;  %vm1025_vm0 = vcmp.eq.f32.partialorder %v1022_v37, inf  ;;  %v1028_v40 = vand.u32 2147483648, %v1022_v37  ;;  %vm1027_vm1 = vcmp.eq.f32.partialorder %v1022_v37, 0.0 }
 0x8d1   :  { %v1900_v38 = vpop.eup %1899 }
 0x8d2   :  { %v1024_v39 = vmul.f32 %v1900_v38, %v1022_v37 }
 0x8d4   :  { %v1026_v41 = vsel %vm1025_vm0, %v1022_v37, %v1024_v39  ;;  %v1247_v37 = vld [vmem:[%s2582_s2 + $0x290] sm:$0xff] }
 0x8d5   :  { %v1029_v42 = vsel %vm1027_vm1, %v1028_v40, %v1026_v41  ;;  %v1427_v41 = vld [vmem:[%s2584_s3 + $0x9] ss:$0 sm:$0xff] }
 0x8d6   :  { %v1030_v43 = vmax.f32 %v1029_v42, 1e-12  ;;  %v1433_v42 = vld [vmem:[%s2584_s3 + $0xa] ss:$0 sm:$0xff] }
 0x8d8   :  { %1901 = vrcp.f32 %v1030_v43 }
 0x8d9   :  { %1903 = vtanh.f32 %v785_v52 }
 0x8da   :  { %1905 = vpow2.f32 %v1429_v59 }
 0x8e2   :  { %v1902_v55 = vpop.eup %1901 }
 0x8e3   :  { %v2496_v56 = vmul.f32 %v1902_v55, %v2456_v19  ;;  %v1904_v58 = vpop.eup %1903 }
 0x8e4   :  { %v1906_v60 = vpop.eup %1905 }
 0x8e5   :  { %v1149_v57 = vrot.slane %v2496_v56, %v2493_v54  ;;  %v1061_v61 = vadd.f32 1.0, %v1906_v60 }
 0x8e7   :  { %1150 = vrot.lane.b32.xlu1 %v1149_v57, %s1928_s7  ;;  %1907 = vrcp.f32 %v1061_v61 }
 0x8e8   :  { %1909 = vpow2.f32 %v1430_v50 }
 0x8eb   :  { %1092 = vrot.lane.b32.xlu1 %v1904_v58, %s1921_s8  ;;  %s1932_s8 = smov 56  }
 0x8ef   :  { %1086 = vrot.lane.b32.xlu1 %v1432_v51, %s1931_s30  ;;  %s1937_s30 = smov 88  }
 0x8f1   :  { %v1908_v1 = vpop.eup %1907 }
 0x8f2   :  { %v1910_v4 = vpop.eup %1909 }
 0x8f3   :  { %v1067_v5 = vadd.f32 1.0, %v1910_v4 }
 0x8f5   :  { %1911 = vrcp.f32 %v1067_v5 }
 0x8ff   :  { %v1912_v8 = vpop.eup %1911 }
 0x959   :  { %v1151_v63 = vpop.permute.xlu1 %1150 }
 0x95a   :  { %v1153_v0 = vadd.f32 %v1151_v63, %v1141_v62 }
 0x95c   :  { %1677 = vmatmul.mubr.msk.f32.vlgmr.msra.gmra.mrb[8].mxu1 %vm281_vm6, %v1153_v0 }
 0x95d   :  { %v1093_v2 = vpop.permute.xlu1 %1092  ;;  %1693 = vmatprep.mubr.msk.f32.mxu1 %vm1925_vm7, %v1926_v35  ;;  %1858 = vmatpush3.bf16.msra.mxu1 %v1857_v20  ;;  %vm1336_vm7 = vcmask 56320  }
 0x95e   :  { %v1095_v3 = vmul.f32 %v1908_v1, %v1093_v2  ;;  %1859 = vmatprep.subr.bf16.mxu1 %v1924_v34 }
 0x960   :  { %1097 = vrot.lane.b32.xlu1 %v1095_v3, %s1932_s8 }
 0x961   :  { %v1087_v6 = vpop.permute.xlu1 %1086  ;;  %1861 = vmatpush3.bf16.msra.mxu1 %v1860_v24 }
 0x962   :  { %v1089_v7 = vmul.f32 %v1908_v1, %v1087_v6  ;;  %v1090_v10 = vmul.f32 %v1912_v8, %v1087_v6  ;;  %1862 = vmatprep.subr.bf16.mxu1 %v1924_v34  ;;  %v1428_v1 = vld [vmem:[%s2584_s3 + $0xb] ss:$0 sm:$0xff] }
 0x965   :  { %1864 = vmatpush3.bf16.msra.mxu1 %v1863_v27 }
 0x966   :  { %1691 = vmatprep.subr.mxu1 %v1926_v35 }
 0x969   :  { %1692 = vmatpush3.msra.mxu1 %v1247_v37 }
 0x9d2   :  { %v1098_v9 = vpop.permute.xlu1 %1097 }
 0x9d3   :  { %v2512_v11 = vadd.f32 %v1098_v9, %v1089_v7  ;;  %v2514_v12 = vadd.f32 %v1098_v9, %v1090_v10 }
 0x9d5   :  { %1913 = vtanh.f32 %v2512_v11 }
 0x9d6   :  { %1915 = vtanh.f32 %v2514_v12 }
 0x9d7   :  { %1917 = vpow2.f32 %v1431_v31 }
 0x9df   :  { %v1914_v13 = vpop.eup %1913 }
 0x9e0   :  { %1106 = vrot.lane.b32.xlu1 %v1914_v13, %s1933_s1  ;;  %v1916_v14 = vpop.eup %1915 }
 0x9e1   :  { %v1918_v32 = vpop.eup %1917 }
 0x9e2   :  { %v1074_v33 = vadd.f32 1.0, %v1918_v32 }
 0x9e4   :  { %1108 = vrot.lane.b32.xlu1 %v1916_v14, %s1933_s1  ;;  %1919 = vrcp.f32 %v1074_v33 }
 0x9ee   :  { %v1920_v38 = vpop.eup %1919 }
 0xa2f   :  { %v1231_v22 = vpop.f32.mrb[8].mxu1 }
 0xa30   :  { %1236 = vrot.lane.b32.xlu1 %v1231_v22, %s1934_s17  ;;  %v1678_v23 = vpop.f32.mrb[9].mxu1 }
 0xa52   :  { %v1107_v36 = vpop.permute.xlu1 %1106 }
 0xa56   :  { %v1109_v34 = vpop.permute.xlu1 %1108 }
 0xa57   :  { %v1111_v35 = vsel %vm1110_vm2, %v1107_v36, %v1109_v34  ;;  %v1115_v39 = vmul.f32 %v1920_v38, %v1109_v34 }
 0xa58   :  { %v1114_v44 = vmul.f32 %v1912_v8, %v1111_v35 }
 0xaa2   :  { %v1237_v46 = vpop.permute.xlu1 %1236 }
 0xaa3   :  { %v1239_v40 = vmul.f32 %v1237_v46, %v1114_v44  ;;  %v1240_v49 = vmul.f32 %v1237_v46, %v1115_v39 }
 0xaa5   :  { %1252 = vrot.lane.b32.xlu0 %v1240_v49, %s1935_s24  ;;  %1250 = vrot.lane.b32.xlu1 %v1239_v40, %s1935_s24 }
 0xaa9   :  { %1039 = vrot.lane.b32.xlu1 %v1427_v41, %s1928_s7 }
 0xaad   :  { %1122 = vrot.lane.b32.xlu1 %v1433_v42, %s1934_s17 }
 0xb17   :  { %v1253_v43 = vpop.permute.xlu0 %1252  ;;  %v1251_v45 = vpop.permute.xlu1 %1250 }
 0xb18   :  { %v1254_v47 = vsel %vm1133_vm3, %v1251_v45, %v1253_v43 }
 0xb19   :  { %1694 = vmatmul.mubr.msk.f32.vlgmr.msra.gmra.mrb[10].mxu1 %vm1255_vm4, %v1254_v47 }
 0xb1b   :  { %v1040_v48 = vpop.permute.xlu1 %1039 }
 0xb1c   :  { %v1042_v52 = vmul.f32 %v1040_v48, %v2456_v19 }
 0xb1e   :  { %1044 = vrot.lane.b32.xlu1 %v1042_v52, %s1928_s7 }
 0xb1f   :  { %v1123_v53 = vpop.permute.xlu1 %1122 }
 0xb20   :  { %v1125_v55 = vmul.f32 %v1123_v53, %v1114_v44  ;;  %v1126_v57 = vmul.f32 %v1123_v53, %v1115_v39 }
 0xb22   :  { %1129 = vrot.lane.b32.xlu1 %v1125_v55, %s1935_s24 }
 0xb26   :  { %1131 = vrot.lane.b32.xlu1 %v1126_v57, %s1935_s24 }
 0xb90   :  { %v1045_v58 = vpop.permute.xlu1 %1044 }
 0xb91   :  { %v1047_v51 = vsel %vm1019_vm15, %v1045_v58, 0.0 }
 0xb92   :  { %1048 = vadd.xlane.f32.xlu1 %v1047_v51 }
 0xb94   :  { %v1130_v59 = vpop.permute.xlu1 %1129 }
 0xb98   :  { %v1132_v60 = vpop.permute.xlu1 %1131 }
 0xb99   :  { %v1134_v61 = vsel %vm1133_vm3, %v1130_v59, %v1132_v60 }
 0xb9a   :  { %v1137_v62 = vsel %vm1136_vm5, %v1134_v61, 0.0 }
 0xb9b   :  { %1138 = vadd.xlane.f32.xlu0 %v1137_v62 }
 0xbec   :  { %v1324_v63 = vpop.f32.mrb[10].mxu1 }
 0xbed   :  { %v1695_v0 = vpop.f32.mrb[11].mxu1 }
 0xc1f   :  { %v1049_v2 = vpop.xlane.xlu1 %1048 }
 0xc20   :  { %v1057_v3 = vadd.f32 %v1428_v1, %v1049_v2 }
 0xc22   :  { %1329 = vrot.lane.b32.xlu0 %v1057_v3, %s1936_s29 }
 0xc26   :  { %1353 = vrot.lane.b32.xlu0 %v1115_v39, %s1937_s30 }
 0xc28   :  { %v1139_v50 = vpop.xlane.xlu0 %1138 }
 0xc29   :  { %v1140_v4 = vadd.f32 %v1428_v1, %v1139_v50 }
 0xc2a   :  { %1342 = vrot.lane.b32.xlu0 %v2496_v56, %s1928_s7 }
 0xc2b   :  { %1333 = vrot.lane.b32.xlu1 %v1140_v4, %s1936_s29 }
 0xc2e   :  { %1362 = vrot.lane.b32.xlu0 %v2514_v12, %s1938_s5 }
 0xc2f   :  { %1351 = vrot.lane.b32.xlu1 %v1114_v44, %s1937_s30 }
 0xc33   :  { %1346 = vrot.lane.b32.xlu1 %v2453_v16, %s1928_s7 }
 0xc37   :  { %1360 = vrot.lane.b32.xlu1 %v2512_v11, %s1938_s5 }
 0xc94   :  { %v1330_v5 = vpop.permute.xlu0 %1329 }
 0xc95   :  { %v1337_v6 = vsel %vm1336_vm7, %v1324_v63, %v1330_v5 }
 0xc98   :  { %v1354_v10 = vpop.permute.xlu0 %1353 }
 0xc9c   :  { %v1343_v13 = vpop.permute.xlu0 %1342 }
 0xc9d   :  { %v1334_v7 = vpop.permute.xlu1 %1333  ;;  %v1370_v18 = vsel %vm281_vm6, %v1343_v13, %v2456_v19 }
 0xc9e   :  { %v1339_v8 = vsel %vm1338_vm8, %v1337_v6, %v1334_v7 }
 0xc9f   :  { %v1341_v9 = vsel %vm1340_vm9, %v1339_v8, 0.0 }
 0xca0   :  { %1367 = vrot.lane.b32.xlu1 %v1341_v9, %s1928_s7  ;;  %v1363_v17 = vpop.permute.xlu0 %1362 }
 0xca1   :  { %v1352_v56 = vpop.permute.xlu1 %1351 }
 0xca2   :  { %v1356_v14 = vsel %vm1355_vm10, %v1352_v56, %v1354_v10 }
 0xca5   :  { %v1347_v12 = vpop.permute.xlu1 %1346 }
 0xca6   :  { %v1371_v16 = vsel %vm281_vm6, %v1347_v12, %v1356_v14 }
 0xca7   :  { %v1373_v15 = vsel %vm1372_vm11, %v1371_v16, 0.0 }
 0xca8   :  { %v1379_v21 = vcombine.low %v1370_v18, %v1373_v15 }
 0xca9   :  { %v1361_v11 = vpop.permute.xlu1 %1360 }
 0xcaa   :  { %v1364_v20 = vsel %vm1338_vm8, %v1361_v11, %v1363_v17  ;;  %v1386_v25 = vrot.slane %v1379_v21, %v2493_v54 }
 0xcab   :  { %v1374_v22 = vsel %vm1255_vm4, %v1364_v20, 0.0 }
 0xd12   :  { %v1368_v23 = vpop.permute.xlu1 %1367 }
 0xd13   :  { %v1375_v24 = vsel %vm281_vm6, %v1374_v22, %v1368_v23 }
 0xd14   :  { %v1393_v26 = vrot.slane %v1375_v24, %v2493_v54 }
 0xd16   :  { %v1394_v27 = vcombine.low %v1386_v25, %v1393_v26 }
 0xd18   :  { %1396 = vst [vmem:[%s2586_s4] sm:$0x3f] %v1394_v27 }

</bundles_post_ra>
